<compile_context>
chip_gen: v6e
topology: v6e:2x2x1
jax: 0.10.0
libtpu: 0.0.40
codegen_flags: <defaults>
</compile_context>

<pallas_src>
import jax
import jax.numpy as jnp
from jax.experimental import pallas as pl
from jax.experimental.pallas import tpu as pltpu

NUM_CLASSES = 10
HIDDEN_SIZE = 512
INPUT_SIZE = 28 * 28          # 784
PADDED_INPUT = 896            # 7 * 128 — lane-aligned K for layer 1
PADDED_CLASSES = 128          # lane-dense classifier output slab


def _round_up(x, m):
    return ((x + m - 1) // m) * m


def mlp_kernel(x_ref, w1_ref, b1_ref, w2_ref, b2_ref, w3_ref, b3_ref, o_ref):
    # All three matmuls run in bf16 on the MXU with f32 accumulation.
    # Bias add + ReLU are applied on the f32 accumulator (v5e has no bf16 VPU).
    h1 = jnp.dot(x_ref[...], w1_ref[...], preferred_element_type=jnp.float32)
    h1 = jnp.maximum(h1 + b1_ref[...], 0.0).astype(jnp.bfloat16)

    h2 = jnp.dot(h1, w2_ref[...], preferred_element_type=jnp.float32)
    h2 = jnp.maximum(h2 + b2_ref[...], 0.0).astype(jnp.bfloat16)

    logits = jnp.dot(h2, w3_ref[...], preferred_element_type=jnp.float32)
    o_ref[...] = (logits + b3_ref[...]).astype(o_ref.dtype)


def _prepare_padded_params(params):
    """Zero-pad to lane-aligned shapes; bf16 weights (cast first), f32 biases."""
    w1, b1, w2, b2, w3, b3 = params
    w1p = jnp.pad(w1.astype(jnp.bfloat16), ((0, PADDED_INPUT - INPUT_SIZE), (0, 0)))
    w2p = w2.astype(jnp.bfloat16)
    w3p = jnp.pad(w3.astype(jnp.bfloat16), ((0, 0), (0, PADDED_CLASSES - NUM_CLASSES)))
    b1p = b1.astype(jnp.float32)
    b2p = b2.astype(jnp.float32)
    b3p = jnp.pad(b3.astype(jnp.float32), ((0, 0), (0, PADDED_CLASSES - NUM_CLASSES)))
    return w1p, b1p, w2p, b2p, w3p, b3p


def _pick_tile(B, batch_tile):
    """Batch tile: multiple of 8 sublanes, <= batch_tile, and (when the batch
    allows it) small enough that the grid has >= 2 steps for v7x megacore."""
    padded_b = _round_up(max(B, 8), 8)
    tile = min(batch_tile, padded_b)
    if padded_b >= 16:
        tile = min(tile, _round_up(pl.cdiv(padded_b, 2), 8))
    tile = max(8, (tile // 8) * 8)
    padded_b = _round_up(padded_b, tile)
    return padded_b, tile


def mlp_forward(x_nchw, params, *, batch_tile=512):
    """x_nchw: (B, 1, 28, 28) float32. Returns logits (B, NUM_CLASSES) float32."""
    B = x_nchw.shape[0]
    padded_b, tile = _pick_tile(B, batch_tile)

    # nn.Flatten; cast to bf16 FIRST, then one pad covering batch + feature dims
    # (avoids materializing an f32 padded tensor on the wrapper side).
    x = x_nchw.reshape(B, -1).astype(jnp.bfloat16)
    x = jnp.pad(x, ((0, padded_b - B), (0, PADDED_INPUT - INPUT_SIZE)))

    w1p, b1p, w2p, b2p, w3p, b3p = _prepare_padded_params(params)

    grid = (padded_b // tile,)

    weight_elems = (PADDED_INPUT * HIDDEN_SIZE
                    + HIDDEN_SIZE * HIDDEN_SIZE
                    + HIDDEN_SIZE * PADDED_CLASSES)
    cost = pl.CostEstimate(
        flops=2 * padded_b * weight_elems,
        transcendentals=0,
        bytes_accessed=(padded_b * PADDED_INPUT * 2      # bf16 x
                        + weight_elems * 2                # bf16 weights
                        + (2 * HIDDEN_SIZE + PADDED_CLASSES) * 4   # f32 biases
                        + padded_b * PADDED_CLASSES * 4),          # f32 out slab
    )

    # Grid-invariant weights/biases: constant index_map (fetched once, stays
    # VMEM-resident across grid steps) + single-buffered to save VMEM.
    def wspec(shape):
        return pl.BlockSpec(shape, lambda i: (0, 0), pipeline_mode=pl.Buffered(1))

    out = pl.pallas_call(
        mlp_kernel,
        out_shape=jax.ShapeDtypeStruct((padded_b, PADDED_CLASSES), jnp.float32),
        grid_spec=pltpu.PrefetchScalarGridSpec(
            num_scalar_prefetch=0,
            grid=grid,
            in_specs=[
                pl.BlockSpec((tile, PADDED_INPUT), lambda i: (i, 0)),
                wspec((PADDED_INPUT, HIDDEN_SIZE)),
                wspec((1, HIDDEN_SIZE)),
                wspec((HIDDEN_SIZE, HIDDEN_SIZE)),
                wspec((1, HIDDEN_SIZE)),
                wspec((HIDDEN_SIZE, PADDED_CLASSES)),
                wspec((1, PADDED_CLASSES)),
            ],
            out_specs=pl.BlockSpec((tile, PADDED_CLASSES), lambda i: (i, 0)),
        ),
        compiler_params=pltpu.CompilerParams(
            dimension_semantics=("parallel",),    # shards grid steps across v7x's 2 TCs
            vmem_limit_bytes=32 * 1024 * 1024,    # headroom for big tiles on v5e too
        ),
        cost_estimate=cost,
    )(x, w1p, b1p, w2p, b2p, w3p, b3p)

    return out[:B, :NUM_CLASSES]


def init_params(key):
    """Deterministic PyTorch-style init: U(-1/sqrt(fan_in), +1/sqrt(fan_in))."""
    ks = jax.random.split(key, 6)

    def linear(kw, kb, fan_in, fan_out):
        bound = 1.0 / jnp.sqrt(jnp.float32(fan_in))
        w = jax.random.uniform(kw, (fan_in, fan_out), jnp.float32, -bound, bound)
        b = jax.random.uniform(kb, (1, fan_out), jnp.float32, -bound, bound)
        return w, b

    w1, b1 = linear(ks[0], ks[1], INPUT_SIZE, HIDDEN_SIZE)
    w2, b2 = linear(ks[2], ks[3], HIDDEN_SIZE, HIDDEN_SIZE)
    w3, b3 = linear(ks[4], ks[5], HIDDEN_SIZE, NUM_CLASSES)
    return (w1, b1, w2, b2, w3, b3)


if __name__ == "__main__":
    key = jax.random.PRNGKey(0)
    k_param, k_x = jax.random.split(key)

    params = init_params(k_param)
    # Small MNIST-like batch: (B, 1, 28, 28) NCHW.
    # B=64 -> padded_b=64, tile=32, grid=(2,): exercises the multi-step path.
    B = 64
    x = jax.random.normal(k_x, (B, 1, 28, 28), jnp.float32)

    logits = mlp_forward(x, params)
    logits = jax.block_until_ready(logits)
    assert logits.shape == (B, NUM_CLASSES)

    # Pure-JAX reference with identical bf16-matmul / f32-accumulate semantics.
    w1p, b1p, w2p, b2p, w3p, b3p = _prepare_padded_params(params)
    xf = x.reshape(B, -1).astype(jnp.bfloat16)
    xf = jnp.pad(xf, ((0, 0), (0, PADDED_INPUT - INPUT_SIZE)))
    h = jnp.dot(xf, w1p, preferred_element_type=jnp.float32)
    h = jnp.maximum(h + b1p, 0.0).astype(jnp.bfloat16)
    h = jnp.dot(h, w2p, preferred_element_type=jnp.float32)
    h = jnp.maximum(h + b2p, 0.0).astype(jnp.bfloat16)
    ref = (jnp.dot(h, w3p, preferred_element_type=jnp.float32) + b3p)[:, :NUM_CLASSES]

    max_err = float(jnp.max(jnp.abs(logits - ref)))
    assert jnp.allclose(logits, ref, atol=5e-3, rtol=5e-3), f"max_err={max_err}"

    # Sanity vs. full-f32 PyTorch semantics (loose: bf16 matmul rounding).
    w1, b1, w2, b2, w3, b3 = params
    xr = x.reshape(B, -1)
    r = jnp.maximum(xr @ w1 + b1, 0.0)
    r = jnp.maximum(r @ w2 + b2, 0.0)
    r = r @ w3 + b3
    assert jnp.allclose(logits, r, atol=0.25, rtol=0.05)

    print("KERNEL_OK")
</pallas_src>

<mosaic_0001>
module attributes {stable_mosaic.version = 11 : i64} {
  func.func @mlp_kernel(%arg0: i32, %arg1: memref<32x896xbf16, #tpu.memory_space<vmem>>, %arg2: memref<896x512xbf16, #tpu.memory_space<vmem>>, %arg3: memref<1x512xf32, #tpu.memory_space<vmem>>, %arg4: memref<512x512xbf16, #tpu.memory_space<vmem>>, %arg5: memref<1x512xf32, #tpu.memory_space<vmem>>, %arg6: memref<512x128xbf16, #tpu.memory_space<vmem>>, %arg7: memref<1x128xf32, #tpu.memory_space<vmem>>, %arg8: memref<32x128xf32, #tpu.memory_space<vmem>>) attributes {dimension_semantics = [#tpu.dimension_semantics<parallel>], iteration_bounds = array<i64: 2>, scalar_prefetch = 0 : i64, scratch_operands = 0 : i64, tpu.core_type = #tpu.core_type<tc>, window_params = [{transform_indices = @transform_0, window_bounds = array<i64: 32, 896>}, {pipeline_mode = #tpu.pipeline_mode<synchronous>, transform_indices = @transform_1, window_bounds = array<i64: 896, 512>}, {pipeline_mode = #tpu.pipeline_mode<synchronous>, transform_indices = @transform_2, window_bounds = array<i64: 1, 512>}, {pipeline_mode = #tpu.pipeline_mode<synchronous>, transform_indices = @transform_3, window_bounds = array<i64: 512, 512>}, {pipeline_mode = #tpu.pipeline_mode<synchronous>, transform_indices = @transform_4, window_bounds = array<i64: 1, 512>}, {pipeline_mode = #tpu.pipeline_mode<synchronous>, transform_indices = @transform_5, window_bounds = array<i64: 512, 128>}, {pipeline_mode = #tpu.pipeline_mode<synchronous>, transform_indices = @transform_6, window_bounds = array<i64: 1, 128>}, {transform_indices = @transform_7, window_bounds = array<i64: 32, 128>}]} {
    %c0 = arith.constant 0 : index
    %c0_0 = arith.constant 0 : index
    %0 = vector.load %arg1[%c0, %c0_0] : memref<32x896xbf16, #tpu.memory_space<vmem>>, vector<32x896xbf16>
    %c0_1 = arith.constant 0 : index
    %c0_2 = arith.constant 0 : index
    %1 = vector.load %arg2[%c0_1, %c0_2] : memref<896x512xbf16, #tpu.memory_space<vmem>>, vector<896x512xbf16>
    %cst = arith.constant dense<0.000000e+00> : vector<32x512xf32>
    %2 = tpu.matmul %0, %1, %cst {dimension_numbers = #tpu.dot_dimension_numbers<[1], [0], [0], [1], [0, 0, 1, 1], [], []>} : vector<32x896xbf16>, vector<896x512xbf16>, vector<32x512xf32> -> vector<32x512xf32>
    %c0_3 = arith.constant 0 : index
    %c0_4 = arith.constant 0 : index
    %3 = vector.load %arg3[%c0_3, %c0_4] : memref<1x512xf32, #tpu.memory_space<vmem>>, vector<1x512xf32>
    %4 = vector.broadcast %3 : vector<1x512xf32> to vector<32x512xf32>
    %5 = arith.addf %2, %4 : vector<32x512xf32>
    %cst_5 = arith.constant 0.000000e+00 : f32
    %6 = vector.broadcast %cst_5 : f32 to vector<32x512xf32>
    %7 = arith.maximumf %5, %6 : vector<32x512xf32>
    %8 = arith.truncf %7 : vector<32x512xf32> to vector<32x512xbf16>
    %c0_6 = arith.constant 0 : index
    %c0_7 = arith.constant 0 : index
    %9 = vector.load %arg4[%c0_6, %c0_7] : memref<512x512xbf16, #tpu.memory_space<vmem>>, vector<512x512xbf16>
    %cst_8 = arith.constant dense<0.000000e+00> : vector<32x512xf32>
    %10 = tpu.matmul %8, %9, %cst_8 {dimension_numbers = #tpu.dot_dimension_numbers<[1], [0], [0], [1], [0, 0, 1, 1], [], []>} : vector<32x512xbf16>, vector<512x512xbf16>, vector<32x512xf32> -> vector<32x512xf32>
    %c0_9 = arith.constant 0 : index
    %c0_10 = arith.constant 0 : index
    %11 = vector.load %arg5[%c0_9, %c0_10] : memref<1x512xf32, #tpu.memory_space<vmem>>, vector<1x512xf32>
    %12 = vector.broadcast %11 : vector<1x512xf32> to vector<32x512xf32>
    %13 = arith.addf %10, %12 : vector<32x512xf32>
    %cst_11 = arith.constant 0.000000e+00 : f32
    %14 = vector.broadcast %cst_11 : f32 to vector<32x512xf32>
    %15 = arith.maximumf %13, %14 : vector<32x512xf32>
    %16 = arith.truncf %15 : vector<32x512xf32> to vector<32x512xbf16>
    %c0_12 = arith.constant 0 : index
    %c0_13 = arith.constant 0 : index
    %17 = vector.load %arg6[%c0_12, %c0_13] : memref<512x128xbf16, #tpu.memory_space<vmem>>, vector<512x128xbf16>
    %cst_14 = arith.constant dense<0.000000e+00> : vector<32x128xf32>
    %18 = tpu.matmul %16, %17, %cst_14 {dimension_numbers = #tpu.dot_dimension_numbers<[1], [0], [0], [1], [0, 0, 1, 1], [], []>} : vector<32x512xbf16>, vector<512x128xbf16>, vector<32x128xf32> -> vector<32x128xf32>
    %c0_15 = arith.constant 0 : index
    %c0_16 = arith.constant 0 : index
    %19 = vector.load %arg7[%c0_15, %c0_16] : memref<1x128xf32, #tpu.memory_space<vmem>>, vector<1x128xf32>
    %20 = vector.broadcast %19 : vector<1x128xf32> to vector<32x128xf32>
    %21 = arith.addf %18, %20 : vector<32x128xf32>
    %c0_17 = arith.constant 0 : index
    %c0_18 = arith.constant 0 : index
    %22 = vector.load %arg8[%c0_17, %c0_18] : memref<32x128xf32, #tpu.memory_space<vmem>>, vector<32x128xf32>
    tpu.vector_store %arg8[%c0_17, %c0_18], %21 {strides = array<i32>} : memref<32x128xf32, #tpu.memory_space<vmem>>, vector<32x128xf32>,
    return
  }
  func.func @transform_0(%arg0: i32) -> (i32, i32) {
    %c0_i32 = arith.constant 0 : i32
    %c0_i32_0 = arith.constant 0 : i32
    return %arg0, %c0_i32 : i32, i32
  }
  func.func @transform_1(%arg0: i32) -> (i32, i32) {
    %c0_i32 = arith.constant 0 : i32
    %c0_i32_0 = arith.constant 0 : i32
    %c0_i32_1 = arith.constant 0 : i32
    return %c0_i32, %c0_i32_0 : i32, i32
  }
  func.func @transform_2(%arg0: i32) -> (i32, i32) {
    %c0_i32 = arith.constant 0 : i32
    %c0_i32_0 = arith.constant 0 : i32
    %c0_i32_1 = arith.constant 0 : i32
    return %c0_i32, %c0_i32_0 : i32, i32
  }
  func.func @transform_3(%arg0: i32) -> (i32, i32) {
    %c0_i32 = arith.constant 0 : i32
    %c0_i32_0 = arith.constant 0 : i32
    %c0_i32_1 = arith.constant 0 : i32
    return %c0_i32, %c0_i32_0 : i32, i32
  }
  func.func @transform_4(%arg0: i32) -> (i32, i32) {
    %c0_i32 = arith.constant 0 : i32
    %c0_i32_0 = arith.constant 0 : i32
    %c0_i32_1 = arith.constant 0 : i32
    return %c0_i32, %c0_i32_0 : i32, i32
  }
  func.func @transform_5(%arg0: i32) -> (i32, i32) {
    %c0_i32 = arith.constant 0 : i32
    %c0_i32_0 = arith.constant 0 : i32
    %c0_i32_1 = arith.constant 0 : i32
    return %c0_i32, %c0_i32_0 : i32, i32
  }
  func.func @transform_6(%arg0: i32) -> (i32, i32) {
    %c0_i32 = arith.constant 0 : i32
    %c0_i32_0 = arith.constant 0 : i32
    %c0_i32_1 = arith.constant 0 : i32
    return %c0_i32, %c0_i32_0 : i32, i32
  }
  func.func @transform_7(%arg0: i32) -> (i32, i32) {
    %c0_i32 = arith.constant 0 : i32
    %c0_i32_0 = arith.constant 0 : i32
    return %arg0, %c0_i32 : i32, i32
  }
}

</mosaic_0001>

<bundles_post_ra>
// kernel: tpu_custom_call.1
= control target key start
LH: loop header
LB: loop body
LE: loop exit
PB: predicated region body
PF: predicated region fallthrough
CT: control target
= control target key end

     0   :  { %s5525_s0 = inlined_call_operand.hbm [shape: bf16[64,896], index: 0, kind: input, shape index: {}]   ;;  %s5526_s1 = inlined_call_operand.hbm [shape: bf16[896,512], index: 1, kind: input, shape index: {}]   ;;  %s5527_s2 = inlined_call_operand.hbm [shape: f32[1,512], index: 2, kind: input, shape index: {}]   ;;  %s5528_s3 = inlined_call_operand.hbm [shape: bf16[512,512], index: 3, kind: input, shape index: {}]   ;;  %s5529_s4 = inlined_call_operand.vmem [shape: f32[1,512], index: 4, kind: input, shape index: {}]   ;;  %s5530_s5 = inlined_call_operand.hbm [shape: bf16[512,128], index: 5, kind: input, shape index: {}]   ;;  %s5531_s6 = inlined_call_operand.vmem [shape: f32[1,128], index: 6, kind: input, shape index: {}]   ;;  %s5532_s7 = inlined_call_operand.hbm [shape: f32[64,128], index: 7, kind: output, shape index: {}]  }
   0x1   :  { %5537 = sst [smem:[#allocation16_spill]] %s5526_s1 }
   0x2   :  { %12 = vsyncpa [#allocation3], 0 }
   0x3   :  { %14 = vsyncpa [#allocation3 + $0x1], 0 }
   0x4   :  { %15 = vsyncpa [#allocation6], 0 }
   0x5   :  { %16 = vsyncpa [#allocation9], 0 }
   0x6   :  { %17 = vsyncpa [#allocation4], 0 }
   0x7   :  { %19 = vsyncpa [#allocation4 + $0x1], 0  ;;  %s5197_s24 = smov 0   ;;  %s5199_s25 = smov 0  }
   0x8   :  { %s5201_s26 = smov 0   ;;  %s5203_s27 = smov 0  }
   0x9 LB: > { %s5218_s28 = sadd.s32 4294967295, %s5140_s27   ;;  %s3775_s29 = sadd.s32 4294967294, %s5140_s27   ;;  %s5140_s27 = sphi %s5203_s27, %s5558_s27   ;;  %s5136_s26 = sphi %s5201_s26, %s5557_s26   ;;  %s5132_s25 = sphi %s5199_s25, %s5556_s25   ;;  %s5128_s24 = sphi %s5197_s24, %s5555_s24  }
   0xa   : > { %p45_p0 = scmp.ne.s32.totalorder %s5132_s25, %s5128_s24  ;;  %p5533_p1 = scmp.eq.s32.totalorder %s5218_s28, 0 }
   0xb   : > { %p201_p3 = scmp.eq.s32.totalorder %s3775_s29, 1  ;;  %p3776_p5 = scmp.ge.s32.totalorder %s5140_s27, 1 }
   0xc   : > { %p5227_p4 = por %p5533_p1, %p45_p0  ;;  %p208_p7 = scmp.lt.s32.totalorder %s5140_s27, 3 }
   0xd   : > { %p5232_p6 = por %p201_p3, %p45_p0  ;;  %s5142_s10 = smov [#allocation5]  }
   0xe   : > { %s5538_s30 = scalar_select %p5227_p4, 1, 0 }
   0xf   : > { %s5539_s8 = scalar_select %p5232_p6, 1, 0 }
  0x10   : > { %p5237_p8 = pnand %p3776_p5, %p208_p7  ;;  %s220_s11 = sshll.u32 %s5142_s10, 4  ;;  %s221_s11 = int_to_ptr.vmem [resolvable:$true] %s220_s11 }
  0x11   : > { %s5143_s13 = smov [#allocation8]   ;;  %s5144_s15 = smov [#allocation7]  }
  0x12   : > { %s5540_s9 = scalar_select %p5237_p8, 1, 0 }
  0x13   : > { %p4275_p9 = pneg %p5237_p8  ;;  %s244_s14 = sshll.u32 %s5143_s13, 4  ;;  %s245_s14 = int_to_ptr.vmem [resolvable:$true] %s244_s14 }
  0x14   : > { %s234_s16 = sshll.u32 %s5144_s15, 4  ;;  %s4947_s17 = scalar_lea.vmem %s221_s11, 28672  ;;  %s235_s16 = int_to_ptr.vmem [resolvable:$true] %s234_s16 }
  0x15   : > { %p5246_p11 = pnand %p4275_p9, %p5533_p1  ;;  %p4948_p13 = scmp.ne.s32.totalorder %s221_s11, %s4947_s17 }
  0x16   : > { %p4955_p5 = scmp.lt.s32.totalorder %s221_s11, %s221_s11  ;;  %p4956_p7 = scmp.lt.s32.totalorder %s4947_s17, %s4947_s17 }
  0x17   : > { %p4938_p12 = pneg %p5246_p11 }
  0x18   : > { %p4957_p9 = por %p4956_p7, %p4955_p5 }
  0x19   : > { %p4950_p0 = pnand %p4948_p13, %p4938_p12 }
  0x1b   : > { %p4951_p3 = pneg %p4950_p0 }
  0x1d   : > { %p4958_p10 = pnand %p4957_p9, %p4951_p3 }
  0x1f   : > { %4961 = shalt.err (!%p4958_p10)
}
  0x20   : > { %s5145_s18 = smov 256   ;;  %s5146_s19 = smov 16  }
  0x21   : > { %s5542_s1 = sld [smem:[#allocation16_spill]]  ;;  %s4973_s22 = scalar_lea.vmem %s245_s14, 16384 }
  0x22   : > { %p4974_p1 = scmp.ne.s32.totalorder %s245_s14, %s4973_s22  ;;  %p4981_p2 = scmp.lt.s32.totalorder %s245_s14, %s245_s14 }
  0x23   : > { %p4982_p6 = scmp.lt.s32.totalorder %s4973_s22, %s4973_s22 }
  0x24   : > { %p4976_p13 = pnand %p4974_p1, %p4938_p12 }
  0x25   : > { %p4983_p5 = por %p4982_p6, %p4981_p2 }
  0x26   : > { %p4977_p0 = pneg %p4976_p13 }
  0x27   : > { %4278 = dma.hbm_to_vmem [thread:$0]  (!%p5246_p11), %s5542_s1, 28672, %s221_s11, [#allocation6], %s5145_s18, %s5145_s18, %s5146_s19  }
  0x28   : > { %p4984_p3 = pnand %p4983_p5, %p4977_p0 }
  0x2a   : > { %4987 = shalt.err (!%p4984_p3)
}
  0x2b   : > { %4284 = dma.hbm_to_vmem [thread:$0]  (!%p5246_p11), %s5528_s3, 16384, %s245_s14, [#allocation9], %s5145_s18, %s5145_s18, %s5146_s19  }
  0x2c   : > { %s4999_s10 = scalar_lea.vmem %s235_s16, 64  ;;  %p5007_p9 = scmp.lt.s32.totalorder %s235_s16, %s235_s16 }
  0x2d   : > { %p5000_p10 = scmp.ne.s32.totalorder %s235_s16, %s4999_s10  ;;  %p5008_p13 = scmp.lt.s32.totalorder %s4999_s10, %s4999_s10 }
  0x2f   : > { %p5002_p7 = pnand %p5000_p10, %p4938_p12  ;;  %p5009_p4 = por %p5008_p13, %p5007_p9 }
  0x31   : > { %p5003_p1 = pneg %p5002_p7 }
  0x33   : > { %p5010_p2 = pnand %p5009_p4, %p5003_p1 }
  0x35   : > { %5013 = shalt.err (!%p5010_p2)
}
  0x36   : > { %4281 = dma.hbm_to_vmem [thread:$0]  (!%p5246_p11), %s5527_s2, 64, %s235_s16, [#allocation6]  }
  0x37   : > { %s5147_s14 = smov [#allocation10]  }
  0x38   : > { %s260_s15 = sshll.u32 %s5147_s14, 4  ;;  %s261_s15 = int_to_ptr.vmem [resolvable:$true] %s260_s15 }
  0x39   : > { %s5025_s17 = scalar_lea.vmem %s261_s15, 4096  ;;  %p5033_p3 = scmp.lt.s32.totalorder %s261_s15, %s261_s15 }
  0x3a   : > { %p5026_p6 = scmp.ne.s32.totalorder %s261_s15, %s5025_s17  ;;  %p5034_p10 = scmp.lt.s32.totalorder %s5025_s17, %s5025_s17 }
  0x3c   : > { %p5028_p0 = pnand %p5026_p6, %p4938_p12  ;;  %p5035_p4 = por %p5034_p10, %p5033_p3 }
  0x3e   : > { %p5029_p5 = pneg %p5028_p0 }
  0x40   : > { %p5036_p7 = pnand %p5035_p4, %p5029_p5 }
  0x42   : > { %5039 = shalt.err (!%p5036_p7)
}
  0x43   : > { %s5148_s18 = smov 64   ;;  %s5149_s16 = smov 4  }
  0x44   : > { %4287 = dma.hbm_to_vmem [thread:$0]  (!%p5246_p11), %s5530_s5, 4096, %s261_s15, [#allocation9], %s5148_s18, %s5148_s18, %s5149_s16  }
  0x45   : > { %s5285_s21 = sadd.s32 1, %s5140_s27   ;;  %s32_s23 = sadd.s32 1, %s5136_s26 }
  0x46   : > { %s29_s22 = ssub.s32 %s5140_s27, %s5285_s21  ;;  %p39_p1 = scmp.ne.s32.totalorder %s5136_s26, %s5132_s25 }
  0x47   : > { %p30_p12 = scmp.eq.s32.totalorder %s29_s22, 0  ;;  %p40_p9 = scmp.eq.s32.totalorder %s5140_s27, 0 }
  0x48   : > { %p5543_p2 = scmp.eq.s32.totalorder %s5218_s28, 1  ;;  %p4300_p0 = scmp.lt.s32.totalorder %s5140_s27, 2 }
  0x49   : > { %s5294_s29 = scalar_select %p30_p12, %s5136_s26, %s32_s23  }
  0x4a   : > { %p41_p13 = por %p40_p9, %p39_p1  ;;  %p5298_p6 = por %p5543_p2, %p39_p1 }
  0x4b   : > { %s277_s12 = sand.u32 1, %s5136_s26   ;;  %s4253_s13 = smul.u32 1792, %s5140_s27 }
  0x4c   : > { %s5544_s10 = scalar_select %p5298_p6, 1, 0 }
  0x4d   : > { %s4252_s11 = smul.u32 112, %s277_s12  ;;  %p5305_p11 = pnand %p4300_p0, %p41_p13 }
  0x4e   : > { %s5312_s18 = scalar_lea.hbm %s5525_s0, %s4253_s13  ;;  %s5316_s20 = scalar_lea.sflag [#allocation3], %s277_s12 }
  0x4f   : > { %s281_s16 = scalar_lea.vmem [#allocation2], %s4252_s11  ;;  %s5040_s22 = scalar_lea.hbm %s5312_s18, 1792 }
  0x50   : > { %s289_s19 = sshll.u32 %s281_s16, 4  ;;  %p5041_p5 = scmp.ne.s32.totalorder %s5312_s18, %s5040_s22  ;;  %s5314_s19 = int_to_ptr.vmem [resolvable:$true] %s289_s19 }
  0x51   : > { %p5042_p3 = pneg %p5305_p11  ;;  %s5045_s13 = scalar_lea.hbm %s5525_s0, 3584 }
  0x52   : > { %p5046_p7 = scmp.lt.s32.totalorder %s5312_s18, %s5525_s0  ;;  %p5047_p12 = scmp.lt.s32.totalorder %s5045_s13, %s5040_s22 }
  0x53   : > { %p5043_p10 = pnand %p5042_p3, %p5041_p5 }
  0x54   : > { %p5048_p1 = por %p5047_p12, %p5046_p7 }
  0x55   : > { %p5044_p4 = pneg %p5043_p10 }
  0x57   : > { %p5049_p9 = pnand %p5048_p1, %p5044_p4 }
  0x59   : > { %5052 = shalt.err (!%p5049_p9)
}
  0x5a   : > { %s5053_s12 = scalar_lea.vmem %s5314_s19, 1792  ;;  %s5150_s11 = smov [#allocation2]  }
  0x5b   : > { %p5054_p13 = scmp.ne.s32.totalorder %s5314_s19, %s5053_s12  ;;  %s5058_s16 = sshll.u32 %s5150_s11, 4  ;;  %s5059_s16 = int_to_ptr.vmem [resolvable:$false] %s5058_s16 }
  0x5c   : > { %s5060_s23 = scalar_lea.vmem %s5059_s16, 3584  ;;  %p5061_p5 = scmp.lt.s32.totalorder %s5314_s19, %s5059_s16 }
  0x5d   : > { %p5056_p2 = pnand %p5054_p13, %p5042_p3  ;;  %p5062_p10 = scmp.lt.s32.totalorder %s5060_s23, %s5053_s12 }
  0x5f   : > { %p5057_p0 = pneg %p5056_p2  ;;  %p5063_p6 = por %p5062_p10, %p5061_p5 }
  0x61   : > { %p5064_p8 = pnand %p5063_p6, %p5057_p0 }
  0x63   : > { %5067 = shalt.err (!%p5064_p8)
}
  0x64   : > { %s5151_s1 = smov 448   ;;  %s5152_s22 = smov 28  }
  0x65   : > { %4291 = dma.hbm_to_vmem [thread:$0]  (!%p5305_p11), %s5312_s18, 1792, %s5314_s19, %s5316_s20, %s5151_s1, %s5151_s1, %s5152_s22  }
  0x66   : > { %p5546_p3 = scmp.ne.s32.totalorder %s5540_s9, 0 }
  0x67   : > { %s5340_s15 = sand.u32 (!%p5546_p3), 1, %s5132_s25   ;;  %p5547_p8 = scmp.ne.s32.totalorder (!%p5546_p3), %s5538_s30, 0 }
  0x68   : > { %301 = sbr.rel (%p5546_p3) target bundleno = 1045 (0x415), region = 48  ;;  %s304_s17 = scalar_lea.sflag (!%p5546_p3), [#allocation3], %s5340_s15 }
  0x69   : > { %s4254_s13 = smul.u32 (!%p5546_p3), 112, %s5340_s15 }
  0x6b   : > { %s5344_s12 = scalar_lea.vmem (!%p5546_p3), [#allocation2], %s4254_s13 }
  0x6d   : > { %5111 = dma.done.wait (%p5547_p8), %s304_s17, 1792  }
  0x6e   : > { %5113 = vsyncadd (%p5547_p8), %s304_s17, 4294965504  ;;  %p5548_p6 = scmp.eq.s32.totalorder %s5218_s28, 0 }
  0x70   : > { %5115 = dma.done.wait (%p5548_p6), [#allocation6], 28736   ;;  %p5549_p11 = pmov %p5548_p6 }
  0x71   : > { %p5550_p4 = pmov %p5548_p6 }
  0x72   : > { %5117 = vsyncadd (%p5549_p11), [#allocation6], 4294938560 }
  0x73   : > { %5119 = dma.done.wait (%p5550_p4), [#allocation9], 20480   ;;  %p5551_p7 = pmov %p5550_p4 }
  0x74   : > { %v4351_v0 = vld [vmem:[#allocation5 + $0xe4] ss:$16 sps:$4 sm:$0xff]   ;;  %v4355_v2 = vld [vmem:[#allocation5 + $0xe0] ss:$16 sps:$4 sm:$0xff]   ;;  %v5362_v51 = vld [vmem:[%s5344_s12 + $0xc] ss:$28 sps:$4 sm:$0xff]  }
  0x75   : > { %5121 = vsyncadd (%p5551_p7), [#allocation9], 4294946816  ;;  %v4353_v1 = vld [vmem:[#allocation5 + $0x2e4] ss:$16 sps:$4 sm:$0xff]   ;;  %1811 = vmatprep.subr.bf16.mxu0 %v4351_v0  ;;  %v4356_v3 = vld [vmem:[#allocation5 + $0x2e0] ss:$16 sps:$4 sm:$0xff]   ;;  %1896 = vmatprep.mubr.bf16.mxu1 %v5362_v51 }
  0x76   : > { %1864 = vmatprep.subr.bf16.mxu1 %v4353_v1  ;;  %v4357_v4 = vld [vmem:[#allocation5 + $0xc4] ss:$16 sps:$4 sm:$0xff]   ;;  %1812 = vmatpush1.bf16.msra.mxu0 %v4355_v2  ;;  %v4361_v6 = vld [vmem:[#allocation5 + $0xc0] ss:$16 sps:$4 sm:$0xff]   ;;  %s3790_s19 = sshll.u32 %s5340_s15, 5  ;;  %s4195_s16 = sshll.u32 %s5218_s28, 9 }
  0x77   : > { %1865 = vmatpush1.bf16.msra.mxu1 %v4356_v3  ;;  %v4359_v5 = vld [vmem:[#allocation5 + $0x2c4] ss:$16 sps:$4 sm:$0xff]   ;;  %1813 = vmatprep.subr.bf16.mxu0 %v4357_v4  ;;  %v4362_v7 = vld [vmem:[#allocation5 + $0x2c0] ss:$16 sps:$4 sm:$0xff]   ;;  %s353_s20 = scalar_lea.vmem [#allocation11], %s3790_s19  ;;  %s5482_s22 = scalar_lea.hbm %s5532_s7, %s4195_s16 }
  0x78   : > { %1866 = vmatprep.subr.bf16.mxu1 %v4359_v5  ;;  %v4363_v8 = vld [vmem:[#allocation5 + $0xa4] ss:$16 sps:$4 sm:$0xff]   ;;  %v4367_v10 = vld [vmem:[#allocation5 + $0xa0] ss:$16 sps:$4 sm:$0xff]   ;;  %s3664_s11 = sshll.u32 %s353_s20, 4  ;;  %s3651_s13 = scalar_lea.sflag [#allocation4], %s5340_s15  ;;  %s5477_s11 = int_to_ptr.vmem [resolvable:$true] %s3664_s11 }
  0x79   : > { %v4365_v9 = vld [vmem:[#allocation5 + $0x2a4] ss:$16 sps:$4 sm:$0xff]   ;;  %v4368_v11 = vld [vmem:[#allocation5 + $0x2a0] ss:$16 sps:$4 sm:$0xff]   ;;  %s5068_s17 = scalar_lea.vmem %s5477_s11, 512  ;;  %p5552_p1 = scmp.ne.s32.totalorder %s5544_s10, 0 }
  0x7a   : > { %1814 = vmatpush1.bf16.msra.mxu0 %v4361_v6  ;;  %v4369_v12 = vld [vmem:[#allocation5 + $0x84] ss:$16 sps:$4 sm:$0xff]   ;;  %v4373_v14 = vld [vmem:[#allocation5 + $0x80] ss:$16 sps:$4 sm:$0xff]   ;;  %p5069_p12 = scmp.ne.s32.totalorder %s5477_s11, %s5068_s17  ;;  %s5154_s28 = smov [#allocation11]  }
  0x7b   : > { %1867 = vmatpush1.bf16.msra.mxu1 %v4362_v7  ;;  %1815 = vmatprep.subr.bf16.mxu0 %v4363_v8  ;;  %v4371_v13 = vld [vmem:[#allocation5 + $0x284] ss:$16 sps:$4 sm:$0xff]   ;;  %v4374_v15 = vld [vmem:[#allocation5 + $0x280] ss:$16 sps:$4 sm:$0xff]  }
  0x7c   : > { %1868 = vmatprep.subr.bf16.mxu1 %v4365_v9  ;;  %v4375_v16 = vld [vmem:[#allocation5 + $0x64] ss:$16 sps:$4 sm:$0xff]   ;;  %v4379_v18 = vld [vmem:[#allocation5 + $0x60] ss:$16 sps:$4 sm:$0xff]   ;;  %p5070_p9 = pnand %p5069_p12, %p5552_p1 }
  0x7d   : > { %v4377_v17 = vld [vmem:[#allocation5 + $0x264] ss:$16 sps:$4 sm:$0xff]   ;;  %v4380_v19 = vld [vmem:[#allocation5 + $0x260] ss:$16 sps:$4 sm:$0xff]  }
  0x7e   : > { %1816 = vmatpush1.bf16.msra.mxu0 %v4367_v10  ;;  %v4381_v20 = vld [vmem:[#allocation5 + $0x44] ss:$16 sps:$4 sm:$0xff]   ;;  %v4385_v22 = vld [vmem:[#allocation5 + $0x40] ss:$16 sps:$4 sm:$0xff]   ;;  %v5371_v10 = vld [vmem:[%s5344_s12 + $0x3c] ss:$28 sps:$4 sm:$0xff]   ;;  %p5071_p13 = pneg %p5070_p9 }
  0x7f   : > { %1869 = vmatpush1.bf16.msra.mxu1 %v4368_v11  ;;  %1817 = vmatprep.subr.bf16.mxu0 %v4369_v12  ;;  %v4383_v21 = vld [vmem:[#allocation5 + $0x244] ss:$16 sps:$4 sm:$0xff]   ;;  %v4386_v23 = vld [vmem:[#allocation5 + $0x240] ss:$16 sps:$4 sm:$0xff]  }
  0x80   : > { %1870 = vmatprep.subr.bf16.mxu1 %v4371_v13  ;;  %v4387_v24 = vld [vmem:[#allocation5 + $0x24] ss:$16 sps:$4 sm:$0xff]   ;;  %v4391_v26 = vld [vmem:[#allocation5 + $0x20] ss:$16 sps:$4 sm:$0xff]  }
  0x81   : > { %v4389_v25 = vld [vmem:[#allocation5 + $0x224] ss:$16 sps:$4 sm:$0xff]   ;;  %v4392_v27 = vld [vmem:[#allocation5 + $0x220] ss:$16 sps:$4 sm:$0xff]  }
  0x82   : > { %1818 = vmatpush1.bf16.msra.mxu0 %v4373_v14  ;;  %v4393_v28 = vld [vmem:[#allocation5 + $0x4] ss:$16 sps:$4 sm:$0xff]   ;;  %v4397_v30 = vld [vmem:[#allocation5] ss:$16 sps:$4 sm:$0xff]  }
  0x83   : > { %1871 = vmatpush1.bf16.msra.mxu1 %v4374_v15  ;;  %1819 = vmatprep.subr.bf16.mxu0 %v4375_v16  ;;  %v4395_v29 = vld [vmem:[#allocation5 + $0x204] ss:$16 sps:$4 sm:$0xff]   ;;  %v4398_v31 = vld [vmem:[#allocation5 + $0x200] ss:$16 sps:$4 sm:$0xff]  }
  0x84   : > { %1872 = vmatprep.subr.bf16.mxu1 %v4377_v17  ;;  %v4399_v32 = vld [vmem:[#allocation5 + $0x1e4] ss:$16 sps:$4 sm:$0xff]   ;;  %v4403_v34 = vld [vmem:[#allocation5 + $0x1e0] ss:$16 sps:$4 sm:$0xff]  }
  0x85   : > { %v4401_v33 = vld [vmem:[#allocation5 + $0x3e4] ss:$16 sps:$4 sm:$0xff]   ;;  %v4404_v35 = vld [vmem:[#allocation5 + $0x3e0] ss:$16 sps:$4 sm:$0xff]  }
  0x86   : > { %1820 = vmatpush1.bf16.msra.mxu0 %v4379_v18  ;;  %v4405_v36 = vld [vmem:[#allocation5 + $0x1c4] ss:$16 sps:$4 sm:$0xff]   ;;  %v4409_v38 = vld [vmem:[#allocation5 + $0x1c0] ss:$16 sps:$4 sm:$0xff]  }
  0x87   : > { %1873 = vmatpush1.bf16.msra.mxu1 %v4380_v19  ;;  %1821 = vmatprep.subr.bf16.mxu0 %v4381_v20  ;;  %v4407_v37 = vld [vmem:[#allocation5 + $0x3c4] ss:$16 sps:$4 sm:$0xff]   ;;  %v4410_v39 = vld [vmem:[#allocation5 + $0x3c0] ss:$16 sps:$4 sm:$0xff]  }
  0x88   : > { %1874 = vmatprep.subr.bf16.mxu1 %v4383_v21  ;;  %v4411_v40 = vld [vmem:[#allocation5 + $0x1a4] ss:$16 sps:$4 sm:$0xff]   ;;  %v4415_v42 = vld [vmem:[#allocation5 + $0x1a0] ss:$16 sps:$4 sm:$0xff]  }
  0x89   : > { %v4413_v41 = vld [vmem:[#allocation5 + $0x3a4] ss:$16 sps:$4 sm:$0xff]   ;;  %v4416_v43 = vld [vmem:[#allocation5 + $0x3a0] ss:$16 sps:$4 sm:$0xff]  }
  0x8a   : > { %1822 = vmatpush1.bf16.msra.mxu0 %v4385_v22  ;;  %v4417_v44 = vld [vmem:[#allocation5 + $0x184] ss:$16 sps:$4 sm:$0xff]   ;;  %v4421_v46 = vld [vmem:[#allocation5 + $0x180] ss:$16 sps:$4 sm:$0xff]  }
  0x8b   : > { %1875 = vmatpush1.bf16.msra.mxu1 %v4386_v23  ;;  %1823 = vmatprep.subr.bf16.mxu0 %v4387_v24  ;;  %v4419_v45 = vld [vmem:[#allocation5 + $0x384] ss:$16 sps:$4 sm:$0xff]   ;;  %v4422_v47 = vld [vmem:[#allocation5 + $0x380] ss:$16 sps:$4 sm:$0xff]  }
  0x8c   : > { %1876 = vmatprep.subr.bf16.mxu1 %v4389_v25  ;;  %v4423_v48 = vld [vmem:[#allocation5 + $0x164] ss:$16 sps:$4 sm:$0xff]   ;;  %v4427_v52 = vld [vmem:[#allocation5 + $0x160] ss:$16 sps:$4 sm:$0xff]  }
  0x8d   : > { %v5359_v49 = vld [vmem:[%s5344_s12 + $0x4] ss:$28 sps:$4 sm:$0xff]   ;;  %v5377_v17 = vld [vmem:[%s5344_s12 + $0x38] ss:$28 sps:$4 sm:$0xff]  }
  0x8e   : > { %1824 = vmatpush1.bf16.msra.mxu0 %v4391_v26  ;;  %v4425_v50 = vld [vmem:[#allocation5 + $0x364] ss:$16 sps:$4 sm:$0xff]   ;;  %1843 = vmatprep.mubr.bf16.mxu0 %v5359_v49  ;;  %v4428_v53 = vld [vmem:[#allocation5 + $0x360] ss:$16 sps:$4 sm:$0xff]   ;;  %v5153_v26 = vmov 0  }
  0x8f   : > { %1877 = vmatpush1.bf16.msra.mxu1 %v4392_v27  ;;  %1825 = vmatprep.subr.bf16.mxu0 %v4393_v28  ;;  %v4429_v54 = vld [vmem:[#allocation5 + $0x144] ss:$16 sps:$4 sm:$0xff]   ;;  %v4433_v56 = vld [vmem:[#allocation5 + $0x140] ss:$16 sps:$4 sm:$0xff]  }
  0x90   : > { %1878 = vmatprep.subr.bf16.mxu1 %v4395_v29  ;;  %v4431_v55 = vld [vmem:[#allocation5 + $0x344] ss:$16 sps:$4 sm:$0xff]   ;;  %v4434_v57 = vld [vmem:[#allocation5 + $0x340] ss:$16 sps:$4 sm:$0xff]  }
  0x91   : > { %v4435_v58 = vld [vmem:[#allocation5 + $0x124] ss:$16 sps:$4 sm:$0xff]   ;;  %v4439_v60 = vld [vmem:[#allocation5 + $0x120] ss:$16 sps:$4 sm:$0xff]  }
  0x92   : > { %1826 = vmatpush1.bf16.msra.mxu0 %v4397_v30  ;;  %v4437_v59 = vld [vmem:[#allocation5 + $0x324] ss:$16 sps:$4 sm:$0xff]   ;;  %v4440_v61 = vld [vmem:[#allocation5 + $0x320] ss:$16 sps:$4 sm:$0xff]  }
  0x93   : > { %1879 = vmatpush1.bf16.msra.mxu1 %v4398_v31  ;;  %1827 = vmatprep.subr.bf16.mxu0 %v4399_v32  ;;  %v4441_v62 = vld [vmem:[#allocation5 + $0x104] ss:$16 sps:$4 sm:$0xff]   ;;  %v4445_v0 = vld [vmem:[#allocation5 + $0x100] ss:$16 sps:$4 sm:$0xff]  }
  0x94   : > { %1880 = vmatprep.subr.bf16.mxu1 %v4401_v33  ;;  %v4443_v63 = vld [vmem:[#allocation5 + $0x304] ss:$16 sps:$4 sm:$0xff]   ;;  %v4446_v1 = vld [vmem:[#allocation5 + $0x300] ss:$16 sps:$4 sm:$0xff]  }
  0x95   : > { %v4455_v2 = vld [vmem:[#allocation5 + $0x4e4] ss:$16 sps:$4 sm:$0xff]   ;;  %v5367_v4 = vld [vmem:[%s5344_s12] ss:$28 sps:$4 sm:$0xff]  }
  0x96   : > { %1828 = vmatpush2.bf16.msra.mxu0 %v4403_v34  ;;  %v4458_v3 = vld [vmem:[#allocation5 + $0x6e4] ss:$16 sps:$4 sm:$0xff]   ;;  %v4453_v6 = vld [vmem:[#allocation5 + $0x4e0] ss:$16 sps:$4 sm:$0xff]  }
  0x97   : > { %1881 = vmatpush2.bf16.msra.mxu1 %v4404_v35  ;;  %1829 = vmatprep.subr.bf16.mxu0 %v4405_v36  ;;  %v4450_v5 = vld [vmem:[%s5344_s12 + $0x8] ss:$28 sps:$4 sm:$0xff]   ;;  %v4456_v7 = vld [vmem:[#allocation5 + $0x6e0] ss:$16 sps:$4 sm:$0xff]  }
  0x98   : > { %1882 = vmatprep.subr.bf16.mxu1 %v4407_v37  ;;  %v4461_v8 = vld [vmem:[#allocation5 + $0x4c4] ss:$16 sps:$4 sm:$0xff]   ;;  %v4459_v12 = vld [vmem:[#allocation5 + $0x4c0] ss:$16 sps:$4 sm:$0xff]  }
  0x99   : > { %v4464_v9 = vld [vmem:[#allocation5 + $0x6c4] ss:$16 sps:$4 sm:$0xff]   ;;  %v4462_v13 = vld [vmem:[#allocation5 + $0x6c0] ss:$16 sps:$4 sm:$0xff]  }
  0x9a   : > { %1830 = vmatpush2.bf16.msra.mxu0 %v4409_v38  ;;  %v4486_v11 = vld [vmem:[%s5344_s12 + $0x44] ss:$28 sps:$4 sm:$0xff]  }
  0x9b   : > { %1883 = vmatpush2.bf16.msra.mxu1 %v4410_v39  ;;  %1831 = vmatprep.subr.bf16.mxu0 %v4411_v40  ;;  %v4467_v14 = vld [vmem:[#allocation5 + $0x4a4] ss:$16 sps:$4 sm:$0xff]   ;;  %v4465_v16 = vld [vmem:[#allocation5 + $0x4a0] ss:$16 sps:$4 sm:$0xff]  }
  0x9c   : > { %1884 = vmatprep.subr.bf16.mxu1 %v4413_v41  ;;  %v4470_v15 = vld [vmem:[#allocation5 + $0x6a4] ss:$16 sps:$4 sm:$0xff]   ;;  %v4488_v18 = vld [vmem:[%s5344_s12 + $0x40] ss:$28 sps:$4 sm:$0xff]  }
  0x9d   : > { %v4468_v19 = vld [vmem:[#allocation5 + $0x6a0] ss:$16 sps:$4 sm:$0xff]   ;;  %v4473_v20 = vld [vmem:[#allocation5 + $0x484] ss:$16 sps:$4 sm:$0xff]  }
  0x9e   : > { %1832 = vmatpush2.bf16.msra.mxu0 %v4415_v42  ;;  %v4476_v21 = vld [vmem:[#allocation5 + $0x684] ss:$16 sps:$4 sm:$0xff]   ;;  %v4471_v22 = vld [vmem:[#allocation5 + $0x480] ss:$16 sps:$4 sm:$0xff]  }
  0x9f   : > { %1885 = vmatpush2.bf16.msra.mxu1 %v4416_v43  ;;  %1833 = vmatprep.subr.bf16.mxu0 %v4417_v44  ;;  %v4474_v23 = vld [vmem:[#allocation5 + $0x680] ss:$16 sps:$4 sm:$0xff]   ;;  %v4481_v24 = vld [vmem:[#allocation5 + $0x464] ss:$16 sps:$4 sm:$0xff]   ;;  %v4513_v43 = vld [vmem:[#allocation5 + $0xec] ss:$16 sps:$4 sm:$0xff]  }
  0xa0   : > { %1886 = vmatprep.subr.bf16.mxu1 %v4419_v45  ;;  %v4484_v25 = vld [vmem:[#allocation5 + $0x664] ss:$16 sps:$4 sm:$0xff]   ;;  %v4479_v27 = vld [vmem:[#allocation5 + $0x460] ss:$16 sps:$4 sm:$0xff]  }
  0xa1   : > { %v4482_v28 = vld [vmem:[#allocation5 + $0x660] ss:$16 sps:$4 sm:$0xff]   ;;  %v4491_v29 = vld [vmem:[#allocation5 + $0x444] ss:$16 sps:$4 sm:$0xff]  }
  0xa2   : > { %1834 = vmatpush2.bf16.msra.mxu0 %v4421_v46  ;;  %v4494_v30 = vld [vmem:[#allocation5 + $0x644] ss:$16 sps:$4 sm:$0xff]   ;;  %v4489_v31 = vld [vmem:[#allocation5 + $0x440] ss:$16 sps:$4 sm:$0xff]   ;;  %v4511_v46 = vld [vmem:[#allocation5 + $0xe8] ss:$16 sps:$4 sm:$0xff]  }
  0xa3   : > { %1887 = vmatpush2.bf16.msra.mxu1 %v4422_v47  ;;  %1835 = vmatprep.subr.bf16.mxu0 %v4423_v48  ;;  %v4492_v32 = vld [vmem:[#allocation5 + $0x640] ss:$16 sps:$4 sm:$0xff]   ;;  %v4497_v33 = vld [vmem:[#allocation5 + $0x424] ss:$16 sps:$4 sm:$0xff]   ;;  %v4519_v48 = vld [vmem:[#allocation5 + $0xcc] ss:$16 sps:$4 sm:$0xff]  }
  0xa4   : > { %1888 = vmatprep.subr.bf16.mxu1 %v4425_v50  ;;  %v4500_v34 = vld [vmem:[#allocation5 + $0x624] ss:$16 sps:$4 sm:$0xff]   ;;  %v4495_v35 = vld [vmem:[#allocation5 + $0x420] ss:$16 sps:$4 sm:$0xff]  }
  0xa5   : > { %v4498_v36 = vld [vmem:[#allocation5 + $0x620] ss:$16 sps:$4 sm:$0xff]   ;;  %v4503_v37 = vld [vmem:[#allocation5 + $0x404] ss:$16 sps:$4 sm:$0xff]  }
  0xa6   : > { %1836 = vmatpush2.bf16.msra.mxu0 %v4427_v52  ;;  %v4506_v38 = vld [vmem:[#allocation5 + $0x604] ss:$16 sps:$4 sm:$0xff]   ;;  %v4501_v39 = vld [vmem:[#allocation5 + $0x400] ss:$16 sps:$4 sm:$0xff]   ;;  %v4517_v52 = vld [vmem:[#allocation5 + $0xc8] ss:$16 sps:$4 sm:$0xff]  }
  0xa7   : > { %1889 = vmatpush2.bf16.msra.mxu1 %v4428_v53  ;;  %1837 = vmatprep.subr.bf16.mxu0 %v4429_v54  ;;  %v4504_v40 = vld [vmem:[#allocation5 + $0x600] ss:$16 sps:$4 sm:$0xff]   ;;  %v4509_v41 = vld [vmem:[#allocation5 + $0x5e4] ss:$16 sps:$4 sm:$0xff]   ;;  %v4525_v54 = vld [vmem:[#allocation5 + $0xac] ss:$16 sps:$4 sm:$0xff]  }
  0xa8   : > { %1890 = vmatprep.subr.bf16.mxu1 %v4431_v55  ;;  %v5383_v42 = vld [vmem:[%s5344_s12 + $0x14] ss:$28 sps:$4 sm:$0xff]  }
  0xa9   : > { %v4507_v44 = vld [vmem:[#allocation5 + $0x5e0] ss:$16 sps:$4 sm:$0xff]   ;;  %v4510_v45 = vld [vmem:[%s5344_s12 + $0x18] ss:$28 sps:$4 sm:$0xff]  }
  0xaa   : > { %1838 = vmatpush2.bf16.msra.mxu0 %v4433_v56  ;;  %v4516_v47 = vld [vmem:[#allocation5 + $0x5c4] ss:$16 sps:$4 sm:$0xff]   ;;  %v4514_v50 = vld [vmem:[#allocation5 + $0x5c0] ss:$16 sps:$4 sm:$0xff]  }
  0xab   : > { %1891 = vmatpush2.bf16.msra.mxu1 %v4434_v57  ;;  %1839 = vmatprep.subr.bf16.mxu0 %v4435_v58  ;;  %v4522_v53 = vld [vmem:[#allocation5 + $0x5a4] ss:$16 sps:$4 sm:$0xff]   ;;  %v4580_v55 = vld [vmem:[%s5344_s12 + $0x50] ss:$28 sps:$4 sm:$0xff]   ;;  %v4523_v57 = vld [vmem:[#allocation5 + $0xa8] ss:$16 sps:$4 sm:$0xff]  }
  0xac   : > { %1892 = vmatprep.subr.bf16.mxu1 %v4437_v59  ;;  %v4520_v56 = vld [vmem:[#allocation5 + $0x5a0] ss:$16 sps:$4 sm:$0xff]   ;;  %v4528_v58 = vld [vmem:[#allocation5 + $0x584] ss:$16 sps:$4 sm:$0xff]   ;;  %v4531_v59 = vld [vmem:[#allocation5 + $0x8c] ss:$16 sps:$4 sm:$0xff]  }
  0xae   : > { %1840 = vmatpush2.bf16.msra.mxu0 %v4439_v60  ;;  %v4526_v60 = vld [vmem:[#allocation5 + $0x580] ss:$16 sps:$4 sm:$0xff]  }
  0xaf   : > { %1893 = vmatpush2.bf16.msra.mxu1 %v4440_v61  ;;  %1841 = vmatprep.subr.bf16.mxu0 %v4441_v62  ;;  %v4529_v61 = vld [vmem:[#allocation5 + $0x88] ss:$16 sps:$4 sm:$0xff]   ;;  %v4534_v62 = vld [vmem:[#allocation5 + $0x564] ss:$16 sps:$4 sm:$0xff]  }
  0xb0   : > { %1894 = vmatprep.subr.bf16.mxu1 %v4443_v63  ;;  %v4537_v63 = vld [vmem:[#allocation5 + $0x6c] ss:$16 sps:$4 sm:$0xff]  }
  0xb2   : > { %1842 = vmatpush2.bf16.msra.mxu0 %v4445_v0  ;;  %v4532_v0 = vld [vmem:[#allocation5 + $0x560] ss:$16 sps:$4 sm:$0xff]  }
  0xb3   : > { %1895 = vmatpush2.bf16.msra.mxu1 %v4446_v1  ;;  %1917 = vmatprep.subr.bf16.mxu0 %v4455_v2  ;;  %v4535_v1 = vld [vmem:[#allocation5 + $0x68] ss:$16 sps:$4 sm:$0xff]   ;;  %v4540_v2 = vld [vmem:[#allocation5 + $0x544] ss:$16 sps:$4 sm:$0xff]  }
  0xb4   : > { %1970 = vmatprep.subr.bf16.mxu1 %v4458_v3  ;;  %v4543_v3 = vld [vmem:[#allocation5 + $0x4c] ss:$16 sps:$4 sm:$0xff]  }
  0xb5   : > { %1844 = vmatmul.mubr.bf16.vlgmr.msra.gmra.mxu0 %v5367_v4 }
  0xb6   : > { %1897 = vmatmul.mubr.bf16.vlgmr.msra.gmra.mxu1 %v4450_v5  ;;  %1918 = vmatpush1.bf16.msra.mxu0 %v4453_v6  ;;  %v4538_v5 = vld [vmem:[#allocation5 + $0x540] ss:$16 sps:$4 sm:$0xff]   ;;  %v4541_v6 = vld [vmem:[#allocation5 + $0x48] ss:$16 sps:$4 sm:$0xff]  }
  0xb7   : > { %1971 = vmatpush1.bf16.msra.mxu1 %v4456_v7  ;;  %1919 = vmatprep.subr.bf16.mxu0 %v4461_v8  ;;  %v4546_v7 = vld [vmem:[#allocation5 + $0x524] ss:$16 sps:$4 sm:$0xff]   ;;  %v4549_v8 = vld [vmem:[#allocation5 + $0x2c] ss:$16 sps:$4 sm:$0xff]  }
  0xb8   : > { %1972 = vmatprep.subr.bf16.mxu1 %v4464_v9  ;;  %1853 = vmatprep.mubr.bf16.mxu0 %v5371_v10  ;;  %v4547_v9 = vld [vmem:[#allocation5 + $0x28] ss:$16 sps:$4 sm:$0xff]  }
  0xb9   : > { %1906 = vmatprep.mubr.bf16.mxu1 %v4486_v11  ;;  %v4552_v11 = vld [vmem:[#allocation5 + $0x504] ss:$16 sps:$4 sm:$0xff]  }
  0xba   : > { %1920 = vmatpush1.bf16.msra.mxu0 %v4459_v12  ;;  %v4555_v12 = vld [vmem:[#allocation5 + $0xc] ss:$16 sps:$4 sm:$0xff]  }
  0xbb   : > { %1973 = vmatpush1.bf16.msra.mxu1 %v4462_v13  ;;  %1921 = vmatprep.subr.bf16.mxu0 %v4467_v14  ;;  %v4550_v13 = vld [vmem:[#allocation5 + $0x500] ss:$16 sps:$4 sm:$0xff]   ;;  %v4553_v14 = vld [vmem:[#allocation5 + $0x8] ss:$16 sps:$4 sm:$0xff]  }
  0xbc   : > { %1974 = vmatprep.subr.bf16.mxu1 %v4470_v15  ;;  %v4561_v15 = vld [vmem:[#allocation5 + $0x1ec] ss:$16 sps:$4 sm:$0xff]  }
  0xbd   : > { %1854 = vmatmul.mubr.bf16.gmra.mxu0 %v5377_v17 }
  0xbe   : > { %1907 = vmatmul.mubr.bf16.gmra.mxu1 %v4488_v18  ;;  %1922 = vmatpush1.bf16.msra.mxu0 %v4465_v16  ;;  %v4564_v16 = vld [vmem:[#allocation5 + $0x2ec] ss:$16 sps:$4 sm:$0xff]  }
  0xbf   : > { %1975 = vmatpush1.bf16.msra.mxu1 %v4468_v19  ;;  %1923 = vmatprep.subr.bf16.mxu0 %v4473_v20  ;;  %v5391_v18 = vld [vmem:[%s5344_s12 + $0x10] ss:$28 sps:$4 sm:$0xff]   ;;  %v4559_v19 = vld [vmem:[#allocation5 + $0x1e8] ss:$16 sps:$4 sm:$0xff]  }
  0xc0   : > { %1976 = vmatprep.subr.bf16.mxu1 %v4476_v21  ;;  %2002 = vmatprep.mubr.bf16.mxu1 %v5153_v26  ;;  %v4562_v20 = vld [vmem:[#allocation5 + $0x2e8] ss:$16 sps:$4 sm:$0xff]   ;;  %v4567_v21 = vld [vmem:[#allocation5 + $0x1cc] ss:$16 sps:$4 sm:$0xff]  }
  0xc1   : > { %1949 = vmatprep.mubr.bf16.mxu0 %v5383_v42 }
  0xc2   : > { %1924 = vmatpush1.bf16.msra.mxu0 %v4471_v22  ;;  %v4570_v22 = vld [vmem:[#allocation5 + $0x2cc] ss:$16 sps:$4 sm:$0xff]  }
  0xc3   : > { %1977 = vmatpush1.bf16.msra.mxu1 %v4474_v23  ;;  %1925 = vmatprep.subr.bf16.mxu0 %v4481_v24  ;;  %v5394_v23 = vld [vmem:[%s5344_s12 + $0x4c] ss:$28 sps:$4 sm:$0xff]  }
  0xc4   : > { %1978 = vmatprep.subr.bf16.mxu1 %v4484_v25  ;;  %v4565_v24 = vld [vmem:[#allocation5 + $0x1c8] ss:$16 sps:$4 sm:$0xff]  }
  0xc5   : > { %v4568_v25 = vld [vmem:[#allocation5 + $0x2c8] ss:$16 sps:$4 sm:$0xff]  }
  0xc6   : > { %1926 = vmatpush1.bf16.msra.mxu0 %v4479_v27  ;;  %v4576_v27 = vld [vmem:[#allocation5 + $0x1ac] ss:$16 sps:$4 sm:$0xff]  }
  0xc7   : > { %1979 = vmatpush1.bf16.msra.mxu1 %v4482_v28  ;;  %1927 = vmatprep.subr.bf16.mxu0 %v4491_v29  ;;  %v4579_v28 = vld [vmem:[#allocation5 + $0x2ac] ss:$16 sps:$4 sm:$0xff]   ;;  %v5399_v29 = vld [vmem:[%s5344_s12 + $0x48] ss:$28 sps:$4 sm:$0xff]  }
  0xc8   : > { %1980 = vmatprep.subr.bf16.mxu1 %v4494_v30  ;;  %v4574_v30 = vld [vmem:[#allocation5 + $0x1a8] ss:$16 sps:$4 sm:$0xff]  }
  0xca   : > { %1928 = vmatpush1.bf16.msra.mxu0 %v4489_v31  ;;  %v4577_v31 = vld [vmem:[#allocation5 + $0x2a8] ss:$16 sps:$4 sm:$0xff]  }
  0xcb   : > { %1981 = vmatpush1.bf16.msra.mxu1 %v4492_v32  ;;  %1929 = vmatprep.subr.bf16.mxu0 %v4497_v33  ;;  %v4583_v32 = vld [vmem:[#allocation5 + $0x18c] ss:$16 sps:$4 sm:$0xff]  }
  0xcc   : > { %1982 = vmatprep.subr.bf16.mxu1 %v4500_v34  ;;  %v4586_v33 = vld [vmem:[#allocation5 + $0x28c] ss:$16 sps:$4 sm:$0xff]   ;;  %v4581_v34 = vld [vmem:[#allocation5 + $0x188] ss:$16 sps:$4 sm:$0xff]  }
  0xce   : > { %1930 = vmatpush1.bf16.msra.mxu0 %v4495_v35  ;;  %v4584_v35 = vld [vmem:[#allocation5 + $0x288] ss:$16 sps:$4 sm:$0xff]  }
  0xcf   : > { %1983 = vmatpush1.bf16.msra.mxu1 %v4498_v36  ;;  %1931 = vmatprep.subr.bf16.mxu0 %v4503_v37  ;;  %v4589_v36 = vld [vmem:[#allocation5 + $0x16c] ss:$16 sps:$4 sm:$0xff]  }
  0xd0   : > { %1984 = vmatprep.subr.bf16.mxu1 %v4506_v38  ;;  %v4592_v37 = vld [vmem:[#allocation5 + $0x26c] ss:$16 sps:$4 sm:$0xff]   ;;  %v4587_v38 = vld [vmem:[#allocation5 + $0x168] ss:$16 sps:$4 sm:$0xff]  }
  0xd2   : > { %1932 = vmatpush1.bf16.msra.mxu0 %v4501_v39  ;;  %v4590_v39 = vld [vmem:[#allocation5 + $0x268] ss:$16 sps:$4 sm:$0xff]  }
  0xd3   : > { %1985 = vmatpush1.bf16.msra.mxu1 %v4504_v40  ;;  %1933 = vmatprep.subr.bf16.mxu0 %v4509_v41  ;;  %v4595_v40 = vld [vmem:[#allocation5 + $0x14c] ss:$16 sps:$4 sm:$0xff]  }
  0xd4   : > { %2023 = vmatprep.subr.bf16.mxu1 %v4513_v43  ;;  %v4598_v41 = vld [vmem:[#allocation5 + $0x24c] ss:$16 sps:$4 sm:$0xff]   ;;  %v4593_v43 = vld [vmem:[#allocation5 + $0x148] ss:$16 sps:$4 sm:$0xff]  }
  0xd6   : > { %2003 = vmatmul.mubr.bf16.vlgmr.msra.gmra.mxu1 %v4510_v45  ;;  %1934 = vmatpush2.bf16.msra.mxu0 %v4507_v44  ;;  %v4596_v44 = vld [vmem:[#allocation5 + $0x248] ss:$16 sps:$4 sm:$0xff]   ;;  %v4601_v45 = vld [vmem:[#allocation5 + $0x12c] ss:$16 sps:$4 sm:$0xff]  }
  0xd7   : > { %2024 = vmatpush1.bf16.msra.mxu1 %v4511_v46  ;;  %1935 = vmatprep.subr.bf16.mxu0 %v4516_v47  ;;  %v4604_v46 = vld [vmem:[#allocation5 + $0x22c] ss:$16 sps:$4 sm:$0xff]   ;;  %v4599_v47 = vld [vmem:[#allocation5 + $0x128] ss:$16 sps:$4 sm:$0xff]  }
  0xd8   : > { %2025 = vmatprep.subr.bf16.mxu1 %v4519_v48  ;;  %2012 = vmatprep.mubr.bf16.mxu1 %v5153_v26  ;;  %v4607_v48 = vld [vmem:[#allocation5 + $0x10c] ss:$16 sps:$4 sm:$0xff]  }
  0xda   : > { %1936 = vmatpush2.bf16.msra.mxu0 %v4514_v50  ;;  %v4610_v50 = vld [vmem:[#allocation5 + $0x20c] ss:$16 sps:$4 sm:$0xff]  }
  0xdb   : > { %2026 = vmatpush1.bf16.msra.mxu1 %v4517_v52  ;;  %1937 = vmatprep.subr.bf16.mxu0 %v4522_v53  ;;  %v4605_v52 = vld [vmem:[#allocation5 + $0x108] ss:$16 sps:$4 sm:$0xff]  }
  0xdc   : > { %2027 = vmatprep.subr.bf16.mxu1 %v4525_v54  ;;  %v4608_v53 = vld [vmem:[#allocation5 + $0x208] ss:$16 sps:$4 sm:$0xff]   ;;  %v4613_v54 = vld [vmem:[#allocation5 + $0x3ec] ss:$16 sps:$4 sm:$0xff]  }
  0xde   : > { %2013 = vmatmul.mubr.bf16.gmra.mxu1 %v4580_v55  ;;  %1938 = vmatpush2.bf16.msra.mxu0 %v4520_v56  ;;  %v4616_v55 = vld [vmem:[#allocation5 + $0x4ec] ss:$16 sps:$4 sm:$0xff]   ;;  %v4611_v56 = vld [vmem:[#allocation5 + $0x3e8] ss:$16 sps:$4 sm:$0xff]  }
  0xdf   : > { %2028 = vmatpush1.bf16.msra.mxu1 %v4523_v57  ;;  %1939 = vmatprep.subr.bf16.mxu0 %v4528_v58  ;;  %v4614_v57 = vld [vmem:[#allocation5 + $0x4e8] ss:$16 sps:$4 sm:$0xff]   ;;  %v4619_v58 = vld [vmem:[#allocation5 + $0x3cc] ss:$16 sps:$4 sm:$0xff]  }
  0xe0   : > { %2029 = vmatprep.subr.bf16.mxu1 %v4531_v59  ;;  %2055 = vmatprep.mubr.bf16.mxu1 %v5359_v49  ;;  %v4544_v49 = vld [vmem:[#allocation5 + $0x520] ss:$16 sps:$4 sm:$0xff]   ;;  %v4622_v59 = vld [vmem:[#allocation5 + $0x4cc] ss:$16 sps:$4 sm:$0xff]  }
  0xe2   : > { %1940 = vmatpush2.bf16.msra.mxu0 %v4526_v60  ;;  %v4617_v60 = vld [vmem:[#allocation5 + $0x3c8] ss:$16 sps:$4 sm:$0xff]  }
  0xe3   : > { %2030 = vmatpush1.bf16.msra.mxu1 %v4529_v61  ;;  %1941 = vmatprep.subr.bf16.mxu0 %v4534_v62  ;;  %v4620_v61 = vld [vmem:[#allocation5 + $0x4c8] ss:$16 sps:$4 sm:$0xff]   ;;  %v4625_v62 = vld [vmem:[#allocation5 + $0x3ac] ss:$16 sps:$4 sm:$0xff]  }
  0xe4   : > { %2031 = vmatprep.subr.bf16.mxu1 %v4537_v63  ;;  %v4628_v63 = vld [vmem:[#allocation5 + $0x4ac] ss:$16 sps:$4 sm:$0xff]  }
  0xe6   : > { %1942 = vmatpush2.bf16.msra.mxu0 %v4532_v0  ;;  %v4623_v0 = vld [vmem:[#allocation5 + $0x3a8] ss:$16 sps:$4 sm:$0xff]  }
  0xe7   : > { %2032 = vmatpush1.bf16.msra.mxu1 %v4535_v1  ;;  %1943 = vmatprep.subr.bf16.mxu0 %v4540_v2  ;;  %v4626_v1 = vld [vmem:[#allocation5 + $0x4a8] ss:$16 sps:$4 sm:$0xff]   ;;  %v4631_v2 = vld [vmem:[#allocation5 + $0x38c] ss:$16 sps:$4 sm:$0xff]  }
  0xe8   : > { %2033 = vmatprep.subr.bf16.mxu1 %v4543_v3  ;;  %v4634_v3 = vld [vmem:[#allocation5 + $0x48c] ss:$16 sps:$4 sm:$0xff]  }
  0xea   : > { %1944 = vmatpush2.bf16.msra.mxu0 %v4538_v5  ;;  %v4629_v5 = vld [vmem:[#allocation5 + $0x388] ss:$16 sps:$4 sm:$0xff]  }
  0xeb   : > { %2034 = vmatpush1.bf16.msra.mxu1 %v4541_v6  ;;  %1945 = vmatprep.subr.bf16.mxu0 %v4546_v7  ;;  %v4637_v6 = vld [vmem:[#allocation5 + $0x36c] ss:$16 sps:$4 sm:$0xff]  }
  0xec   : > { %2035 = vmatprep.subr.bf16.mxu1 %v4549_v8  ;;  %v4640_v7 = vld [vmem:[#allocation5 + $0x46c] ss:$16 sps:$4 sm:$0xff]   ;;  %v4638_v8 = vld [vmem:[#allocation5 + $0x468] ss:$16 sps:$4 sm:$0xff]  }
  0xee   : > { %1946 = vmatpush2.bf16.msra.mxu0 %v4544_v49  ;;  %v4643_v49 = vld [vmem:[#allocation5 + $0x34c] ss:$16 sps:$4 sm:$0xff]  }
  0xef   : > { %2036 = vmatpush1.bf16.msra.mxu1 %v4547_v9  ;;  %1947 = vmatprep.subr.bf16.mxu0 %v4552_v11  ;;  %v4646_v9 = vld [vmem:[#allocation5 + $0x44c] ss:$16 sps:$4 sm:$0xff]   ;;  %v4641_v11 = vld [vmem:[#allocation5 + $0x348] ss:$16 sps:$4 sm:$0xff]  }
  0xf0   : > { %2037 = vmatprep.subr.bf16.mxu1 %v4555_v12  ;;  %v4644_v12 = vld [vmem:[#allocation5 + $0x448] ss:$16 sps:$4 sm:$0xff]  }
  0xf2   : > { %1948 = vmatpush2.bf16.msra.mxu0 %v4550_v13  ;;  %v4652_v13 = vld [vmem:[#allocation5 + $0x42c] ss:$16 sps:$4 sm:$0xff]  }
  0xf3   : > { %2038 = vmatpush1.bf16.msra.mxu1 %v4553_v14  ;;  %2076 = vmatprep.subr.bf16.mxu0 %v4564_v16  ;;  %v4647_v14 = vld [vmem:[#allocation5 + $0x328] ss:$16 sps:$4 sm:$0xff]   ;;  %v4655_v16 = vld [vmem:[#allocation5 + $0x30c] ss:$16 sps:$4 sm:$0xff]  }
  0xf4   : > { %2039 = vmatprep.subr.bf16.mxu1 %v4561_v15  ;;  %v4650_v15 = vld [vmem:[#allocation5 + $0x428] ss:$16 sps:$4 sm:$0xff]  }
  0xf5   : > { %1950 = vmatmul.mubr.bf16.vlgmr.msra.gmra.mxu0 %v5391_v18 }
  0xf6   : > { %2077 = vmatpush1.bf16.msra.mxu0 %v4562_v20  ;;  %1959 = vmatprep.mubr.bf16.mxu0 %v5394_v23  ;;  %v4656_v20 = vld [vmem:[#allocation5 + $0x408] ss:$16 sps:$4 sm:$0xff]  }
  0xf7   : > { %2040 = vmatpush2.bf16.msra.mxu1 %v4559_v19  ;;  %2078 = vmatprep.subr.bf16.mxu0 %v4570_v22  ;;  %v4653_v19 = vld [vmem:[#allocation5 + $0x308] ss:$16 sps:$4 sm:$0xff]   ;;  %v4664_v22 = vld [vmem:[#allocation5 + $0x6ec] ss:$16 sps:$4 sm:$0xff]  }
  0xf8   : > { %2041 = vmatprep.subr.bf16.mxu1 %v4567_v21  ;;  %v4661_v21 = vld [vmem:[#allocation5 + $0x5ec] ss:$16 sps:$4 sm:$0xff]  }
  0xfa   : > { %2079 = vmatpush1.bf16.msra.mxu0 %v4568_v25  ;;  %v4662_v25 = vld [vmem:[#allocation5 + $0x6e8] ss:$16 sps:$4 sm:$0xff]  }
  0xfb   : > { %2042 = vmatpush2.bf16.msra.mxu1 %v4565_v24  ;;  %2080 = vmatprep.subr.bf16.mxu0 %v4579_v28  ;;  %v4659_v24 = vld [vmem:[#allocation5 + $0x5e8] ss:$16 sps:$4 sm:$0xff]   ;;  %v4670_v28 = vld [vmem:[#allocation5 + $0x6cc] ss:$16 sps:$4 sm:$0xff]  }
  0xfc   : > { %2043 = vmatprep.subr.bf16.mxu1 %v4576_v27  ;;  %v4667_v27 = vld [vmem:[#allocation5 + $0x5cc] ss:$16 sps:$4 sm:$0xff]  }
  0xfd   : > { %1960 = vmatmul.mubr.bf16.gmra.mxu0 %v5399_v29 }
  0xfe   : > { %2081 = vmatpush1.bf16.msra.mxu0 %v4577_v31  ;;  %2108 = vmatprep.mubr.bf16.mxu0 %v5362_v51  ;;  %v4602_v51 = vld [vmem:[#allocation5 + $0x228] ss:$16 sps:$4 sm:$0xff]  }
  0xff   : > { %2044 = vmatpush2.bf16.msra.mxu1 %v4574_v30  ;;  %2082 = vmatprep.subr.bf16.mxu0 %v4586_v33  ;;  %v4665_v30 = vld [vmem:[#allocation5 + $0x5c8] ss:$16 sps:$4 sm:$0xff]   ;;  %v4673_v33 = vld [vmem:[#allocation5 + $0x5ac] ss:$16 sps:$4 sm:$0xff]  }
 0x100   : > { %2045 = vmatprep.subr.bf16.mxu1 %v4583_v32  ;;  %v4668_v31 = vld [vmem:[#allocation5 + $0x6c8] ss:$16 sps:$4 sm:$0xff]  }
 0x101   : > { %v4931_v32 = vld [vmem:[%s5344_s12 + $0x8] ss:$28 sps:$4 sm:$0xff]  }
 0x102   : > { %2083 = vmatpush1.bf16.msra.mxu0 %v4584_v35  ;;  %v4671_v35 = vld [vmem:[#allocation5 + $0x5a8] ss:$16 sps:$4 sm:$0xff]  }
 0x103   : > { %2046 = vmatpush2.bf16.msra.mxu1 %v4581_v34  ;;  %2084 = vmatprep.subr.bf16.mxu0 %v4592_v37  ;;  %v4676_v34 = vld [vmem:[#allocation5 + $0x6ac] ss:$16 sps:$4 sm:$0xff]   ;;  %v4932_v37 = vld [vmem:[%s5344_s12 + $0x44] ss:$28 sps:$4 sm:$0xff]  }
 0x104   : > { %2047 = vmatprep.subr.bf16.mxu1 %v4589_v36  ;;  %v4674_v36 = vld [vmem:[#allocation5 + $0x6a8] ss:$16 sps:$4 sm:$0xff]  }
 0x106   : > { %2085 = vmatpush1.bf16.msra.mxu0 %v4590_v39  ;;  %v4682_v39 = vld [vmem:[#allocation5 + $0x68c] ss:$16 sps:$4 sm:$0xff]  }
 0x107   : > { %2048 = vmatpush2.bf16.msra.mxu1 %v4587_v38  ;;  %2086 = vmatprep.subr.bf16.mxu0 %v4598_v41  ;;  %v4679_v38 = vld [vmem:[#allocation5 + $0x58c] ss:$16 sps:$4 sm:$0xff]   ;;  %v4680_v41 = vld [vmem:[#allocation5 + $0x688] ss:$16 sps:$4 sm:$0xff]  }
 0x108   : > { %2049 = vmatprep.subr.bf16.mxu1 %v4595_v40  ;;  %v4677_v40 = vld [vmem:[#allocation5 + $0x588] ss:$16 sps:$4 sm:$0xff]  }
 0x10a   : > { %2087 = vmatpush1.bf16.msra.mxu0 %v4596_v44  ;;  %v4685_v44 = vld [vmem:[#allocation5 + $0x56c] ss:$16 sps:$4 sm:$0xff]  }
 0x10b   : > { %2050 = vmatpush2.bf16.msra.mxu1 %v4593_v43  ;;  %2088 = vmatprep.subr.bf16.mxu0 %v4604_v46  ;;  %v4933_v43 = vld [vmem:[%s5344_s12 + $0x40] ss:$28 sps:$4 sm:$0xff]   ;;  %v4683_v46 = vld [vmem:[#allocation5 + $0x568] ss:$16 sps:$4 sm:$0xff]  }
 0x10c   : > { %2051 = vmatprep.subr.bf16.mxu1 %v4601_v45  ;;  %v4688_v45 = vld [vmem:[#allocation5 + $0x66c] ss:$16 sps:$4 sm:$0xff]  }
 0x10e   : > { %2089 = vmatpush1.bf16.msra.mxu0 %v4602_v51  ;;  %v4691_v51 = vld [vmem:[#allocation5 + $0x54c] ss:$16 sps:$4 sm:$0xff]  }
 0x10f   : > { %2052 = vmatpush2.bf16.msra.mxu1 %v4599_v47  ;;  %2090 = vmatprep.subr.bf16.mxu0 %v4610_v50  ;;  %v4686_v47 = vld [vmem:[#allocation5 + $0x668] ss:$16 sps:$4 sm:$0xff]  }
 0x110   : > { %2053 = vmatprep.subr.bf16.mxu1 %v4607_v48  ;;  %v4694_v48 = vld [vmem:[#allocation5 + $0x64c] ss:$16 sps:$4 sm:$0xff]   ;;  %v4689_v50 = vld [vmem:[#allocation5 + $0x548] ss:$16 sps:$4 sm:$0xff]  }
 0x112   : > { %2091 = vmatpush1.bf16.msra.mxu0 %v4608_v53  ;;  %v4697_v53 = vld [vmem:[#allocation5 + $0x52c] ss:$16 sps:$4 sm:$0xff]  }
 0x113   : > { %2054 = vmatpush2.bf16.msra.mxu1 %v4605_v52  ;;  %2092 = vmatprep.subr.bf16.mxu0 %v4613_v54  ;;  %v4692_v52 = vld [vmem:[#allocation5 + $0x648] ss:$16 sps:$4 sm:$0xff]   ;;  %v4700_v54 = vld [vmem:[#allocation5 + $0x62c] ss:$16 sps:$4 sm:$0xff]  }
 0x114   : > { %2129 = vmatprep.subr.bf16.mxu1 %v4616_v55  ;;  %v4695_v55 = vld [vmem:[#allocation5 + $0x528] ss:$16 sps:$4 sm:$0xff]  }
 0x116   : > { %2056 = vmatmul.mubr.bf16.vlgmr.msra.gmra.mxu1 %v5367_v4  ;;  %2093 = vmatpush2.bf16.msra.mxu0 %v4611_v56  ;;  %v4632_v4 = vld [vmem:[#allocation5 + $0x488] ss:$16 sps:$4 sm:$0xff]  }
 0x117   : > { %2130 = vmatpush1.bf16.msra.mxu1 %v4614_v57  ;;  %2094 = vmatprep.subr.bf16.mxu0 %v4619_v58  ;;  %v4698_v56 = vld [vmem:[#allocation5 + $0x628] ss:$16 sps:$4 sm:$0xff]   ;;  %v4703_v57 = vld [vmem:[#allocation5 + $0x50c] ss:$16 sps:$4 sm:$0xff]  }
 0x118   : > { %2131 = vmatprep.subr.bf16.mxu1 %v4622_v59  ;;  %2065 = vmatprep.mubr.bf16.mxu1 %v5371_v10  ;;  %v4635_v10 = vld [vmem:[#allocation5 + $0x368] ss:$16 sps:$4 sm:$0xff]   ;;  %v4706_v58 = vld [vmem:[#allocation5 + $0x60c] ss:$16 sps:$4 sm:$0xff]  }
 0x119   : > { %v4701_v59 = vld [vmem:[#allocation5 + $0x508] ss:$16 sps:$4 sm:$0xff]  }
 0x11a   : > { %2095 = vmatpush2.bf16.msra.mxu0 %v4617_v60  ;;  %v4704_v60 = vld [vmem:[#allocation5 + $0x608] ss:$16 sps:$4 sm:$0xff]  }
 0x11b   : > { %2132 = vmatpush1.bf16.msra.mxu1 %v4620_v61  ;;  %2096 = vmatprep.subr.bf16.mxu0 %v4625_v62  ;;  %v4709_v61 = vld [vmem:[#allocation8 + $0xe4] ss:$16 sps:$4 sm:$0xff]   ;;  %v4707_v62 = vld [vmem:[#allocation8 + $0xe0] ss:$16 sps:$4 sm:$0xff]  }
 0x11c   : > { %2133 = vmatprep.subr.bf16.mxu1 %v4628_v63  ;;  %v4712_v63 = vld [vmem:[#allocation8 + $0xc4] ss:$16 sps:$4 sm:$0xff]  }
 0x11e   : > { %2066 = vmatmul.mubr.bf16.gmra.mxu1 %v5377_v17  ;;  %2097 = vmatpush2.bf16.msra.mxu0 %v4623_v0  ;;  %v4649_v17 = vld [vmem:[#allocation5 + $0x32c] ss:$16 sps:$4 sm:$0xff]   ;;  %v4934_v0 = vld [vmem:[%s5344_s12 + $0x18] ss:$28 sps:$4 sm:$0xff]  }
 0x11f   : > { %2134 = vmatpush1.bf16.msra.mxu1 %v4626_v1  ;;  %2098 = vmatprep.subr.bf16.mxu0 %v4631_v2  ;;  %v4710_v1 = vld [vmem:[#allocation8 + $0xc0] ss:$16 sps:$4 sm:$0xff]   ;;  %v4715_v2 = vld [vmem:[#allocation8 + $0xa4] ss:$16 sps:$4 sm:$0xff]  }
 0x120   : > { %2135 = vmatprep.subr.bf16.mxu1 %v4634_v3  ;;  %2161 = vmatprep.mubr.bf16.mxu1 %v5383_v42  ;;  %v4658_v42 = vld [vmem:[#allocation5 + $0x40c] ss:$16 sps:$4 sm:$0xff]   ;;  %v4713_v3 = vld [vmem:[#allocation8 + $0xa0] ss:$16 sps:$4 sm:$0xff]  }
 0x122   : > { %2099 = vmatpush2.bf16.msra.mxu0 %v4629_v5  ;;  %v4718_v5 = vld [vmem:[#allocation8 + $0x84] ss:$16 sps:$4 sm:$0xff]  }
 0x123   : > { %2136 = vmatpush1.bf16.msra.mxu1 %v4632_v4  ;;  %2100 = vmatprep.subr.bf16.mxu0 %v4637_v6  ;;  %v4935_v4 = vld [vmem:[%s5344_s12 + $0x50] ss:$28 sps:$4 sm:$0xff]   ;;  %v4716_v6 = vld [vmem:[#allocation8 + $0x80] ss:$16 sps:$4 sm:$0xff]   ;;  %s5072_s12 = sshll.u32 %s5154_s28, 4  ;;  %s5073_s12 = int_to_ptr.vmem [resolvable:$false] %s5072_s12 }
 0x124   : > { %2137 = vmatprep.subr.bf16.mxu1 %v4640_v7  ;;  %v4779_v7 = vld [vmem:[#allocation8 + $0x2e0] ss:$16 sps:$4 sm:$0xff]   ;;  %s5074_s30 = scalar_lea.vmem %s5073_s12, 1024  ;;  %p5075_p2 = scmp.lt.s32.totalorder %s5477_s11, %s5073_s12 }
 0x125   : > { %p5076_p0 = scmp.lt.s32.totalorder %s5074_s30, %s5068_s17 }
 0x126   : > { %2101 = vmatpush2.bf16.msra.mxu0 %v4635_v10  ;;  %v4724_v10 = vld [vmem:[#allocation8 + $0x44] ss:$16 sps:$4 sm:$0xff]  }
 0x127   : > { %2138 = vmatpush1.bf16.msra.mxu1 %v4638_v8  ;;  %2102 = vmatprep.subr.bf16.mxu0 %v4643_v49  ;;  %v4785_v8 = vld [vmem:[#allocation8 + $0x2c0] ss:$16 sps:$4 sm:$0xff]   ;;  %v4787_v49 = vld [vmem:[#allocation8 + $0x2c4] ss:$16 sps:$4 sm:$0xff]   ;;  %p5077_p5 = por %p5076_p0, %p5075_p2 }
 0x128   : > { %2139 = vmatprep.subr.bf16.mxu1 %v4646_v9  ;;  %v4722_v9 = vld [vmem:[#allocation8 + $0x40] ss:$16 sps:$4 sm:$0xff]  }
 0x129   : > { %p5078_p10 = pnand %p5077_p5, %p5071_p13 }
 0x12a   : > { %2103 = vmatpush2.bf16.msra.mxu0 %v4641_v11  ;;  %v4791_v11 = vld [vmem:[#allocation8 + $0x2a0] ss:$16 sps:$4 sm:$0xff]  }
 0x12b   : > { %2140 = vmatpush1.bf16.msra.mxu1 %v4644_v12  ;;  %2104 = vmatprep.subr.bf16.mxu0 %v4649_v17  ;;  %v4793_v12 = vld [vmem:[#allocation8 + $0x2a4] ss:$16 sps:$4 sm:$0xff]   ;;  %v4725_v17 = vld [vmem:[#allocation8 + $0x20] ss:$16 sps:$4 sm:$0xff]  }
 0x12c   : > { %2141 = vmatprep.subr.bf16.mxu1 %v4652_v13  ;;  %v4730_v13 = vld [vmem:[#allocation8 + $0x4] ss:$16 sps:$4 sm:$0xff]  }
 0x12e   : > { %2105 = vmatpush2.bf16.msra.mxu0 %v4647_v14  ;;  %v4797_v14 = vld [vmem:[#allocation8 + $0x280] ss:$16 sps:$4 sm:$0xff]  }
 0x12f   : > { %2142 = vmatpush1.bf16.msra.mxu1 %v4650_v15  ;;  %2106 = vmatprep.subr.bf16.mxu0 %v4655_v16  ;;  %v4799_v15 = vld [vmem:[#allocation8 + $0x284] ss:$16 sps:$4 sm:$0xff]   ;;  %v4728_v16 = vld [vmem:[#allocation8] ss:$16 sps:$4 sm:$0xff]  }
 0x130   : > { %2143 = vmatprep.subr.bf16.mxu1 %v4658_v42  ;;  %v4733_v42 = vld [vmem:[#allocation8 + $0x1e4] ss:$16 sps:$4 sm:$0xff]  }
 0x132   : > { %2107 = vmatpush2.bf16.msra.mxu0 %v4653_v19  ;;  %v4803_v19 = vld [vmem:[#allocation8 + $0x260] ss:$16 sps:$4 sm:$0xff]  }
 0x133   : > { %2144 = vmatpush1.bf16.msra.mxu1 %v4656_v20  ;;  %2182 = vmatprep.subr.bf16.mxu0 %v4664_v22  ;;  %v4805_v20 = vld [vmem:[#allocation8 + $0x264] ss:$16 sps:$4 sm:$0xff]  }
 0x134   : > { %2145 = vmatprep.subr.bf16.mxu1 %v4661_v21  ;;  %v4731_v21 = vld [vmem:[#allocation8 + $0x1e0] ss:$16 sps:$4 sm:$0xff]   ;;  %v4736_v22 = vld [vmem:[#allocation8 + $0x1c4] ss:$16 sps:$4 sm:$0xff]  }
 0x135   : > { %2109 = vmatmul.mubr.bf16.vlgmr.msra.gmra.mxu0 %v4931_v32  ;;  %v4742_v32 = vld [vmem:[#allocation8 + $0x184] ss:$16 sps:$4 sm:$0xff]  }
 0x136   : > { %2183 = vmatpush1.bf16.msra.mxu0 %v4662_v25  ;;  %2118 = vmatprep.mubr.bf16.mxu0 %v4932_v37  ;;  %v4811_v25 = vld [vmem:[#allocation8 + $0x244] ss:$16 sps:$4 sm:$0xff]  }
 0x137   : > { %2146 = vmatpush2.bf16.msra.mxu1 %v4659_v24  ;;  %2184 = vmatprep.subr.bf16.mxu0 %v4670_v28  ;;  %v4734_v24 = vld [vmem:[#allocation8 + $0x1c0] ss:$16 sps:$4 sm:$0xff]   ;;  %v4745_v37 = vld [vmem:[#allocation8 + $0x164] ss:$16 sps:$4 sm:$0xff]  }
 0x138   : > { %2147 = vmatprep.subr.bf16.mxu1 %v4667_v27  ;;  %v4739_v27 = vld [vmem:[#allocation8 + $0x1a4] ss:$16 sps:$4 sm:$0xff]   ;;  %v4809_v28 = vld [vmem:[#allocation8 + $0x240] ss:$16 sps:$4 sm:$0xff]  }
 0x13a   : > { %2185 = vmatpush1.bf16.msra.mxu0 %v4668_v31  ;;  %v4817_v31 = vld [vmem:[#allocation8 + $0x224] ss:$16 sps:$4 sm:$0xff]  }
 0x13b   : > { %2148 = vmatpush2.bf16.msra.mxu1 %v4665_v30  ;;  %2186 = vmatprep.subr.bf16.mxu0 %v4676_v34  ;;  %v4737_v30 = vld [vmem:[#allocation8 + $0x1a0] ss:$16 sps:$4 sm:$0xff]  }
 0x13c   : > { %2149 = vmatprep.subr.bf16.mxu1 %v4673_v33  ;;  %v4815_v33 = vld [vmem:[#allocation8 + $0x220] ss:$16 sps:$4 sm:$0xff]  }
 0x13d   : > { %2119 = vmatmul.mubr.bf16.gmra.mxu0 %v4933_v43  ;;  %v4821_v34 = vld [vmem:[#allocation8 + $0x200] ss:$16 sps:$4 sm:$0xff]  }
 0x13e   : > { %2187 = vmatpush1.bf16.msra.mxu0 %v4674_v36  ;;  %2214 = vmatprep.mubr.bf16.mxu0 %v5153_v26  ;;  %v4740_v36 = vld [vmem:[#allocation8 + $0x180] ss:$16 sps:$4 sm:$0xff]  }
 0x13f   : > { %2150 = vmatpush2.bf16.msra.mxu1 %v4671_v35  ;;  %2188 = vmatprep.subr.bf16.mxu0 %v4682_v39  ;;  %v4823_v35 = vld [vmem:[#allocation8 + $0x204] ss:$16 sps:$4 sm:$0xff]   ;;  %v4830_v43 = vld [vmem:[#allocation8 + $0x3c0] ss:$16 sps:$4 sm:$0xff]  }
 0x140   : > { %2151 = vmatprep.subr.bf16.mxu1 %v4679_v38  ;;  %v4827_v38 = vld [vmem:[#allocation8 + $0x3e0] ss:$16 sps:$4 sm:$0xff]   ;;  %v4829_v39 = vld [vmem:[#allocation8 + $0x3e4] ss:$16 sps:$4 sm:$0xff]  }
 0x142   : > { %2189 = vmatpush1.bf16.msra.mxu0 %v4680_v41  ;;  %v4748_v41 = vld [vmem:[#allocation8 + $0x144] ss:$16 sps:$4 sm:$0xff]  }
 0x143   : > { %2152 = vmatpush2.bf16.msra.mxu1 %v4677_v40  ;;  %2190 = vmatprep.subr.bf16.mxu0 %v4688_v45  ;;  %v4743_v40 = vld [vmem:[#allocation8 + $0x160] ss:$16 sps:$4 sm:$0xff]  }
 0x144   : > { %2153 = vmatprep.subr.bf16.mxu1 %v4685_v44  ;;  %v4832_v44 = vld [vmem:[#allocation8 + $0x3c4] ss:$16 sps:$4 sm:$0xff]   ;;  %v4746_v45 = vld [vmem:[#allocation8 + $0x140] ss:$16 sps:$4 sm:$0xff]  }
 0x146   : > { %2191 = vmatpush1.bf16.msra.mxu0 %v4686_v47  ;;  %v4751_v47 = vld [vmem:[#allocation8 + $0x124] ss:$16 sps:$4 sm:$0xff]  }
 0x147   : > { %2154 = vmatpush2.bf16.msra.mxu1 %v4683_v46  ;;  %2192 = vmatprep.subr.bf16.mxu0 %v4694_v48  ;;  %v4835_v46 = vld [vmem:[#allocation8 + $0x3a4] ss:$16 sps:$4 sm:$0xff]   ;;  %v4749_v48 = vld [vmem:[#allocation8 + $0x120] ss:$16 sps:$4 sm:$0xff]  }
 0x148   : > { %2155 = vmatprep.subr.bf16.mxu1 %v4691_v51  ;;  %v4833_v51 = vld [vmem:[#allocation8 + $0x3a0] ss:$16 sps:$4 sm:$0xff]  }
 0x14a   : > { %2193 = vmatpush1.bf16.msra.mxu0 %v4692_v52 }
 0x14b   : > { %2156 = vmatpush2.bf16.msra.mxu1 %v4689_v50  ;;  %2194 = vmatprep.subr.bf16.mxu0 %v4700_v54  ;;  %v4754_v50 = vld [vmem:[#allocation8 + $0x104] ss:$16 sps:$4 sm:$0xff]   ;;  %v4836_v54 = vld [vmem:[#allocation8 + $0x380] ss:$16 sps:$4 sm:$0xff]  }
 0x14c   : > { %2157 = vmatprep.subr.bf16.mxu1 %v4697_v53  ;;  %v4838_v53 = vld [vmem:[#allocation8 + $0x384] ss:$16 sps:$4 sm:$0xff]  }
 0x14e   : > { %2195 = vmatpush1.bf16.msra.mxu0 %v4698_v56  ;;  %v4841_v56 = vld [vmem:[#allocation8 + $0x364] ss:$16 sps:$4 sm:$0xff]  }
 0x14f   : > { %2158 = vmatpush2.bf16.msra.mxu1 %v4695_v55  ;;  %2196 = vmatprep.subr.bf16.mxu0 %v4706_v58  ;;  %v4752_v55 = vld [vmem:[#allocation8 + $0x100] ss:$16 sps:$4 sm:$0xff]  }
 0x150   : > { %2159 = vmatprep.subr.bf16.mxu1 %v4703_v57  ;;  %v4757_v57 = vld [vmem:[#allocation8 + $0xec] ss:$16 sps:$4 sm:$0xff]  }
 0x152   : > { %2197 = vmatpush1.bf16.msra.mxu0 %v4704_v60 }
 0x153   : > { %2160 = vmatpush2.bf16.msra.mxu1 %v4701_v59  ;;  %3049 = vmatprep.subr.bf16.mxu0 %v4709_v61  ;;  %v4839_v59 = vld [vmem:[#allocation8 + $0x360] ss:$16 sps:$4 sm:$0xff]   ;;  %v4844_v61 = vld [vmem:[#allocation8 + $0x344] ss:$16 sps:$4 sm:$0xff]  }
 0x155   : > { %2215 = vmatmul.mubr.bf16.vlgmr.msra.gmra.mxu0 %v4934_v0 }
 0x156   : > { %2162 = vmatmul.mubr.bf16.vlgmr.msra.gmra.mxu1 %v5391_v18  ;;  %2224 = vmatprep.mubr.bf16.mxu0 %v5153_v26  ;;  %v4721_v18 = vld [vmem:[#allocation8 + $0x64] ss:$16 sps:$4 sm:$0xff]   ;;  %v4719_v26 = vld [vmem:[#allocation8 + $0x60] ss:$16 sps:$4 sm:$0xff]  }
 0x157   : > { %2171 = vmatprep.mubr.bf16.mxu1 %v5394_v23  ;;  %3050 = vmatpush1.bf16.msra.mxu0 %v4707_v62  ;;  %v4781_v23 = vld [vmem:[#allocation8 + $0x2e4] ss:$16 sps:$4 sm:$0xff]   ;;  %v4842_v62 = vld [vmem:[#allocation8 + $0x340] ss:$16 sps:$4 sm:$0xff]  }
 0x158   : > { %3051 = vmatprep.subr.bf16.mxu0 %v4712_v63  ;;  %3102 = vmatprep.subr.bf16.mxu1 %v4781_v23  ;;  %v599_v23 = vlaneseq }
 0x159   : > { %3103 = vmatpush1.bf16.msra.mxu1 %v4779_v7 }
 0x15a   : > { %3104 = vmatprep.subr.bf16.mxu1 %v4787_v49  ;;  %v5417_v49 = vshrl.u32 %v599_v23, 7 }
 0x15b   : > { %3052 = vmatpush1.bf16.msra.mxu0 %v4710_v1 }
 0x15c   : > { %3053 = vmatprep.subr.bf16.mxu0 %v4715_v2  ;;  %v4847_v2 = vld [vmem:[#allocation8 + $0x324] ss:$16 sps:$4 sm:$0xff]  }
 0x15d   : > { %2225 = vmatmul.mubr.bf16.gmra.mxu0 %v4935_v4  ;;  %3105 = vmatpush1.bf16.msra.mxu1 %v4785_v8 }
 0x15e   : > { %2172 = vmatmul.mubr.bf16.gmra.mxu1 %v5399_v29  ;;  %v4727_v29 = vld [vmem:[#allocation8 + $0x24] ss:$16 sps:$4 sm:$0xff]   ;;  %3106 = vmatprep.subr.bf16.mxu1 %v4793_v12  ;;  %v605_v12 = vsub.s32 1, %v5417_v49 }
 0x15f   : > { %3054 = vmatpush1.bf16.msra.mxu0 %v4713_v3  ;;  %v4845_v3 = vld [vmem:[#allocation8 + $0x320] ss:$16 sps:$4 sm:$0xff]  }
 0x160   : > { %3055 = vmatprep.subr.bf16.mxu0 %v4718_v5 }
 0x161   : > { %3107 = vmatpush1.bf16.msra.mxu1 %v4791_v11 }
 0x162   : > { %3108 = vmatprep.subr.bf16.mxu1 %v4799_v15 }
 0x163   : > { %3056 = vmatpush1.bf16.msra.mxu0 %v4716_v6  ;;  %v4850_v6 = vld [vmem:[#allocation8 + $0x304] ss:$16 sps:$4 sm:$0xff]  }
 0x164   : > { %3057 = vmatprep.subr.bf16.mxu0 %v4721_v18  ;;  %v4848_v18 = vld [vmem:[#allocation8 + $0x300] ss:$16 sps:$4 sm:$0xff]  }
 0x165   : > { %3109 = vmatpush1.bf16.msra.mxu1 %v4797_v14  ;;  %v5421_v14 = vld [vmem:[#allocation7] sm:$0xf] }
 0x166   : > { %3110 = vmatprep.subr.bf16.mxu1 %v4805_v20 }
 0x167   : > { %3058 = vmatpush1.bf16.msra.mxu0 %v4719_v26 }
 0x168   : > { %3059 = vmatprep.subr.bf16.mxu0 %v4724_v10  ;;  %v4853_v10 = vld [vmem:[#allocation8 + $0x2ec] ss:$16 sps:$4 sm:$0xff]  }
 0x169   : > { %3111 = vmatpush1.bf16.msra.mxu1 %v4803_v19 }
 0x16a   : > { %3112 = vmatprep.subr.bf16.mxu1 %v4811_v25 }
 0x16b   : > { %3060 = vmatpush1.bf16.msra.mxu0 %v4722_v9 }
 0x16c   : > { %3061 = vmatprep.subr.bf16.mxu0 %v4727_v29 }
 0x16d   : > { %3113 = vmatpush1.bf16.msra.mxu1 %v4809_v28 }
 0x16e   : > { %3114 = vmatprep.subr.bf16.mxu1 %v4817_v31 }
 0x16f   : > { %3062 = vmatpush1.bf16.msra.mxu0 %v4725_v17  ;;  %v601_v17 = vsub.s32 0, %v5417_v49 }
 0x170   : > { %3063 = vmatprep.subr.bf16.mxu0 %v4730_v13 }
 0x171   : > { %3115 = vmatpush1.bf16.msra.mxu1 %v4815_v33 }
 0x172   : > { %3116 = vmatprep.subr.bf16.mxu1 %v4823_v35 }
 0x173   : > { %3064 = vmatpush1.bf16.msra.mxu0 %v4728_v16  ;;  %v606_v16 = vrot.slane %v5421_v14, %v605_v12 }
 0x174   : > { %3065 = vmatprep.subr.bf16.mxu0 %v4733_v42  ;;  %v602_v42 = vrot.slane %v5421_v14, %v601_v17 }
 0x175   : > { %3117 = vmatpush1.bf16.msra.mxu1 %v4821_v34  ;;  %v1845_v63 = vpop.f32.mrf.mxu0 }
 0x176   : > { %3118 = vmatprep.subr.bf16.mxu1 %v4829_v39  ;;  %v1898_v52 = vpop.f32.mrf.mxu1 }
 0x177   : > { %3066 = vmatpush2.bf16.msra.mxu0 %v4731_v21  ;;  %v1847_v5 = vpop.f32.mrf.mxu0 }
 0x178   : > { %3067 = vmatprep.subr.bf16.mxu0 %v4736_v22  ;;  %v1900_v58 = vpop.f32.mrf.mxu1  ;;  %v1848_v21 = vadd.f32 %v1847_v5, %v606_v16  ;;  %v1846_v22 = vadd.f32 %v1845_v63, %v602_v42 }
 0x179   : > { %3119 = vmatpush2.bf16.msra.mxu1 %v4827_v38  ;;  %v1849_v7 = vpop.f32.mrf.mxu0 }
 0x17a   : > { %3120 = vmatprep.subr.bf16.mxu1 %v4832_v44  ;;  %v1902_v60 = vpop.f32.mrf.mxu1  ;;  %v1850_v25 = vadd.f32 %v1849_v7, %v602_v42  ;;  %v4755_v7 = vld [vmem:[#allocation8 + $0xe8] ss:$16 sps:$4 sm:$0xff]  }
 0x17b   : > { %3068 = vmatpush2.bf16.msra.mxu0 %v4734_v24  ;;  %v1851_v8 = vpop.f32.mrf.mxu0 }
 0x17c   : > { %3069 = vmatprep.subr.bf16.mxu0 %v4739_v27  ;;  %v1904_v0 = vpop.f32.mrf.mxu1  ;;  %v1852_v31 = vadd.f32 %v1851_v8, %v606_v16  ;;  %v1903_v35 = vadd.f32 %v1902_v60, %v1850_v25  ;;  %v4760_v8 = vld [vmem:[#allocation8 + $0xcc] ss:$16 sps:$4 sm:$0xff]  }
 0x17d   : > { %3121 = vmatpush2.bf16.msra.mxu1 %v4830_v43  ;;  %v1855_v9 = vpop.f32.mrf.mxu0  ;;  %v4766_v25 = vld [vmem:[#allocation8 + $0x8c] ss:$16 sps:$4 sm:$0xff]  }
 0x17e   : > { %3122 = vmatprep.subr.bf16.mxu1 %v4835_v46  ;;  %v1908_v1 = vpop.f32.mrf.mxu1  ;;  %v1905_v39 = vadd.f32 %v1904_v0, %v1852_v31  ;;  %v1856_v43 = vadd.f32 %v1855_v9, %v602_v42  ;;  %v4772_v31 = vld [vmem:[#allocation8 + $0x4c] ss:$16 sps:$4 sm:$0xff]  }
 0x17f   : > { %3070 = vmatpush2.bf16.msra.mxu0 %v4737_v30  ;;  %v1857_v13 = vpop.f32.mrf.mxu0  ;;  %v1901_v30 = vadd.f32 %v1900_v58, %v1848_v21 }
 0x180   : > { %3071 = vmatprep.subr.bf16.mxu0 %v4742_v32  ;;  %v1910_v4 = vpop.f32.mrf.mxu1  ;;  %v1899_v32 = vadd.f32 %v1898_v52, %v1846_v22  ;;  %v4761_v22 = vld [vmem:[#allocation8 + $0xa8] ss:$16 sps:$4 sm:$0xff]  }
 0x181   : > { %3123 = vmatpush2.bf16.msra.mxu1 %v4833_v51  ;;  %v1859_v19 = vpop.f32.mrf.mxu0 }
 0x182   : > { %3124 = vmatprep.subr.bf16.mxu1 %v4838_v53  ;;  %v1912_v26 = vpop.f32.mrf.mxu1  ;;  %v1860_v46 = vadd.f32 %v1859_v19, %v602_v42 }
 0x183   : > { %3072 = vmatpush2.bf16.msra.mxu0 %v4740_v36  ;;  %v1861_v24 = vpop.f32.mrf.mxu0 }
 0x184   : > { %3073 = vmatprep.subr.bf16.mxu0 %v4745_v37  ;;  %v1914_v29 = vpop.f32.mrf.mxu1  ;;  %v1862_v52 = vadd.f32 %v1861_v24, %v606_v16  ;;  %v1913_v60 = vadd.f32 %v1912_v26, %v1860_v46  ;;  %v4808_v46 = vld [vmem:[#allocation8 + $0x16c] ss:$16 sps:$4 sm:$0xff]  }
 0x185   : > { %3125 = vmatpush2.bf16.msra.mxu1 %v4836_v54 }
 0x186   : > { %3126 = vmatprep.subr.bf16.mxu1 %v4841_v56  ;;  %v1909_v56 = vadd.f32 %v1908_v1, %v1856_v43  ;;  %v1915_v5 = vadd.f32 %v1914_v29, %v1862_v52  ;;  %v4763_v29 = vld [vmem:[#allocation8 + $0xac] ss:$16 sps:$4 sm:$0xff]   ;;  %v4794_v43 = vld [vmem:[#allocation8 + $0x1a8] ss:$16 sps:$4 sm:$0xff]  }
 0x187   : > { %3074 = vmatpush2.bf16.msra.mxu0 %v4743_v40  ;;  %v1858_v40 = vadd.f32 %v1857_v13, %v606_v16  ;;  %v4818_v52 = vld [vmem:[#allocation8 + $0x128] ss:$16 sps:$4 sm:$0xff]  }
 0x188   : > { %3075 = vmatprep.subr.bf16.mxu0 %v4748_v41 }
 0x189   : > { %3127 = vmatpush2.bf16.msra.mxu1 %v4839_v59  ;;  %v1911_v54 = vadd.f32 %v1910_v4, %v1858_v40  ;;  %v4788_v40 = vld [vmem:[#allocation8 + $0x1c8] ss:$16 sps:$4 sm:$0xff]  }
 0x18a   : > { %3128 = vmatprep.subr.bf16.mxu1 %v4844_v61 }
 0x18b   : > { %3076 = vmatpush2.bf16.msra.mxu0 %v4746_v45 }
 0x18c   : > { %3077 = vmatprep.subr.bf16.mxu0 %v4751_v47 }
 0x18d   : > { %3129 = vmatpush2.bf16.msra.mxu1 %v4842_v62 }
 0x18e   : > { %3130 = vmatprep.subr.bf16.mxu1 %v4847_v2 }
 0x18f   : > { %3078 = vmatpush2.bf16.msra.mxu0 %v4749_v48 }
 0x190   : > { %3079 = vmatprep.subr.bf16.mxu0 %v4754_v50 }
 0x191   : > { %3131 = vmatpush2.bf16.msra.mxu1 %v4845_v3 }
 0x192   : > { %3132 = vmatprep.subr.bf16.mxu1 %v4850_v6 }
 0x193   : > { %3080 = vmatpush2.bf16.msra.mxu0 %v4752_v55 }
 0x194   : > { %3155 = vmatprep.subr.bf16.mxu0 %v4757_v57 }
 0x195   : > { %3133 = vmatpush2.bf16.msra.mxu1 %v4848_v18 }
 0x196   : > { %3208 = vmatprep.subr.bf16.mxu1 %v4853_v10  ;;  %v2004_v11 = vpop.f32.mrf.mxu1 }
 0x198   : > { %v2006_v15 = vpop.f32.mrf.mxu1 }
 0x19a   : > { %v2008_v20 = vpop.f32.mrf.mxu1 }
 0x19c   : > { %v2010_v27 = vpop.f32.mrf.mxu1 }
 0x19e   : > { %v2014_v34 = vpop.f32.mrf.mxu1 }
 0x1a0   : > { %v2016_v45 = vpop.f32.mrf.mxu1 }
 0x1a2   : > { %v2018_v59 = vpop.f32.mrf.mxu1 }
 0x1a4   : > { %v2020_v10 = vpop.f32.mrf.mxu1 }
 0x1b5   : > { %v1951_v28 = vpop.f32.mrf.mxu0 }
 0x1b6   : > { %v1952_v37 = vadd.f32 %v1951_v28, %v1899_v32  ;;  %v4769_v28 = vld [vmem:[#allocation8 + $0x6c] ss:$16 sps:$4 sm:$0xff]   ;;  %v4770_v32 = vld [vmem:[#allocation8 + $0x48] ss:$16 sps:$4 sm:$0xff]  }
 0x1b7   : > { %v1953_v33 = vpop.f32.mrf.mxu0 }
 0x1b8   : > { %v1954_v36 = vadd.f32 %v1953_v33, %v1901_v30  ;;  %v2005_v50 = vadd.f32 %v2004_v11, %v1952_v37  ;;  %v4767_v30 = vld [vmem:[#allocation8 + $0x68] ss:$16 sps:$4 sm:$0xff]   ;;  %v4775_v33 = vld [vmem:[#allocation8 + $0x2c] ss:$16 sps:$4 sm:$0xff]  }
 0x1b9   : > { %v1955_v38 = vpop.f32.mrf.mxu0  ;;  %v4784_v37 = vld [vmem:[#allocation8 + $0x1ec] ss:$16 sps:$4 sm:$0xff]  }
 0x1ba   : > { %v1956_v41 = vadd.f32 %v1955_v38, %v1903_v35  ;;  %v2007_v47 = vadd.f32 %v2006_v15, %v1954_v36  ;;  %v2235_v0 = vmax.f32 %v2005_v50, 0.0  ;;  %v4758_v15 = vld [vmem:[#allocation8 + $0xc8] ss:$16 sps:$4 sm:$0xff]   ;;  %v4778_v35 = vld [vmem:[#allocation8 + $0xc] ss:$16 sps:$4 sm:$0xff]  }
 0x1bb   : > { %v1957_v44 = vpop.f32.mrf.mxu0  ;;  %v4776_v36 = vld [vmem:[#allocation8 + $0x8] ss:$16 sps:$4 sm:$0xff]   ;;  %v4820_v50 = vld [vmem:[#allocation8 + $0x12c] ss:$16 sps:$4 sm:$0xff]  }
 0x1bc   : > { %v2009_v51 = vadd.f32 %v2008_v20, %v1956_v41  ;;  %v1958_v48 = vadd.f32 %v1957_v44, %v1905_v39  ;;  %v2236_v61 = vmax.f32 %v2007_v47, 0.0  ;;  %v4782_v38 = vld [vmem:[#allocation8 + $0x1e8] ss:$16 sps:$4 sm:$0xff]   ;;  %v4790_v39 = vld [vmem:[#allocation8 + $0x1cc] ss:$16 sps:$4 sm:$0xff]  }
 0x1bd   : > { %v1961_v53 = vpop.f32.mrf.mxu0  ;;  %v4796_v41 = vld [vmem:[#allocation8 + $0x1ac] ss:$16 sps:$4 sm:$0xff]   ;;  %v4806_v47 = vld [vmem:[#allocation8 + $0x168] ss:$16 sps:$4 sm:$0xff]  }
 0x1be   : > { %v2011_v55 = vadd.f32 %v2010_v27, %v1958_v48  ;;  %v2239_v57 = vmax.f32 %v2009_v51, 0.0  ;;  %v1962_v2 = vadd.f32 %v1961_v53, %v1909_v56  ;;  %v4764_v27 = vld [vmem:[#allocation8 + $0x88] ss:$16 sps:$4 sm:$0xff]   ;;  %v4802_v44 = vld [vmem:[#allocation8 + $0x18c] ss:$16 sps:$4 sm:$0xff]  }
 0x1bf   : > { %v1963_v58 = vpop.f32.mrf.mxu0  ;;  %v4814_v51 = vld [vmem:[#allocation8 + $0x14c] ss:$16 sps:$4 sm:$0xff]   ;;  %v4812_v48 = vld [vmem:[#allocation8 + $0x148] ss:$16 sps:$4 sm:$0xff]  }
 0x1c0   : > { %v2240_v62 = vmax.f32 %v2011_v55, 0.0  ;;  %v1964_v63 = vadd.f32 %v1963_v58, %v1911_v54  ;;  %v5429_v23 = vpack.c.bf16 %v2239_v57, %v2235_v0  ;;  %v2015_v26 = vadd.f32 %v2014_v34, %v1962_v2  ;;  %v4773_v34 = vld [vmem:[#allocation8 + $0x28] ss:$16 sps:$4 sm:$0xff]   ;;  %v4826_v55 = vld [vmem:[#allocation8 + $0x10c] ss:$16 sps:$4 sm:$0xff]  }
 0x1c1   : > { %v1965_v3 = vpop.f32.mrf.mxu0  ;;  %v4824_v58 = vld [vmem:[#allocation8 + $0x108] ss:$16 sps:$4 sm:$0xff]  }
 0x1c2   : > { %v1966_v6 = vadd.f32 %v1965_v3, %v1913_v60  ;;  %v2252_v18 = vpack.c.bf16 %v2240_v62, %v2236_v61  ;;  %v2017_v1 = vadd.f32 %v2016_v45, %v1964_v63  ;;  %v2243_v20 = vmax.f32 %v2015_v26, 0.0  ;;  %v4800_v45 = vld [vmem:[#allocation8 + $0x188] ss:$16 sps:$4 sm:$0xff]  }
 0x1c3   : > { %v1967_v4 = vpop.f32.mrf.mxu0 }
 0x1c4   : > { %v1968_v9 = vadd.f32 %v1967_v4, %v1915_v5  ;;  %v2019_v11 = vadd.f32 %v2018_v59, %v1966_v6  ;;  %3081 = vmatprep.mubr.bf16.mxu0 %v2252_v18  ;;  %v2244_v42 = vmax.f32 %v2017_v1, 0.0  ;;  %v613_v5 = vsub.s32 3, %v5417_v49 }
 0x1c5   : > { %3082 = vmatmul.mubr.bf16.vlgmr.msra.gmra.mxu0 %v5429_v23  ;;  %v609_v6 = vsub.s32 2, %v5417_v49 }
 0x1c6   : > { %v2021_v13 = vadd.f32 %v2020_v10, %v1968_v9  ;;  %3156 = vmatpush1.bf16.msra.mxu0 %v4755_v7  ;;  %v2247_v16 = vmax.f32 %v2019_v11, 0.0  ;;  %v614_v4 = vrot.slane %v5421_v14, %v613_v5 }
 0x1c7   : > { %3157 = vmatprep.subr.bf16.mxu0 %v4760_v8 }
 0x1c8   : > { %v2248_v19 = vmax.f32 %v2021_v13, 0.0  ;;  %v5434_v24 = vpack.c.bf16 %v2247_v16, %v2243_v20 }
 0x1ca   : > { %v5432_v21 = vpack.c.bf16 %v2248_v19, %v2244_v42  ;;  %3158 = vmatpush1.bf16.msra.mxu0 %v4758_v15 }
 0x1cb   : > { %3159 = vmatprep.subr.bf16.mxu0 %v4763_v29 }
 0x1cc   : > { %3091 = vmatprep.mubr.bf16.mxu0 %v5432_v21 }
 0x1cd   : > { %3092 = vmatmul.mubr.bf16.gmra.mxu0 %v5434_v24 }
 0x1ce   : > { %3160 = vmatpush1.bf16.msra.mxu0 %v4761_v22  ;;  %3187 = vmatprep.mubr.bf16.mxu0 %v2252_v18 }
 0x1cf   : > { %3161 = vmatprep.subr.bf16.mxu0 %v4766_v25 }
 0x1d2   : > { %3162 = vmatpush1.bf16.msra.mxu0 %v4764_v27 }
 0x1d3   : > { %3163 = vmatprep.subr.bf16.mxu0 %v4769_v28 }
 0x1d6   : > { %3164 = vmatpush1.bf16.msra.mxu0 %v4767_v30  ;;  %v2057_v53 = vpop.f32.mrf.mxu1 }
 0x1d7   : > { %3165 = vmatprep.subr.bf16.mxu0 %v4772_v31 }
 0x1d8   : > { %v2059_v56 = vpop.f32.mrf.mxu1 }
 0x1d9   : > { %v2060_v1 = vadd.f32 %v2059_v56, %v614_v4 }
 0x1da   : > { %3166 = vmatpush1.bf16.msra.mxu0 %v4770_v32  ;;  %v2061_v59 = vpop.f32.mrf.mxu1 }
 0x1db   : > { %3167 = vmatprep.subr.bf16.mxu0 %v4775_v33 }
 0x1dc   : > { %v2063_v61 = vpop.f32.mrf.mxu1 }
 0x1dd   : > { %v2064_v19 = vadd.f32 %v2063_v61, %v614_v4 }
 0x1de   : > { %3168 = vmatpush1.bf16.msra.mxu0 %v4773_v34  ;;  %v2067_v63 = vpop.f32.mrf.mxu1 }
 0x1df   : > { %3169 = vmatprep.subr.bf16.mxu0 %v4778_v35 }
 0x1e0   : > { %v2069_v2 = vpop.f32.mrf.mxu1 }
 0x1e1   : > { %v2070_v28 = vadd.f32 %v2069_v2, %v614_v4 }
 0x1e2   : > { %3170 = vmatpush1.bf16.msra.mxu0 %v4776_v36  ;;  %v2071_v18 = vpop.f32.mrf.mxu1 }
 0x1e3   : > { %3171 = vmatprep.subr.bf16.mxu0 %v4784_v37 }
 0x1e4   : > { %v2073_v10 = vpop.f32.mrf.mxu1 }
 0x1e6   : > { %3172 = vmatpush2.bf16.msra.mxu0 %v4782_v38 }
 0x1e7   : > { %3173 = vmatprep.subr.bf16.mxu0 %v4790_v39 }
 0x1ea   : > { %3174 = vmatpush2.bf16.msra.mxu0 %v4788_v40 }
 0x1eb   : > { %3175 = vmatprep.subr.bf16.mxu0 %v4796_v41  ;;  %v2074_v41 = vadd.f32 %v2073_v10, %v614_v4 }
 0x1ee   : > { %3176 = vmatpush2.bf16.msra.mxu0 %v4794_v43 }
 0x1ef   : > { %3177 = vmatprep.subr.bf16.mxu0 %v4802_v44 }
 0x1f2   : > { %3178 = vmatpush2.bf16.msra.mxu0 %v4800_v45 }
 0x1f3   : > { %3179 = vmatprep.subr.bf16.mxu0 %v4808_v46 }
 0x1f5   : > { %v2110_v54 = vpop.f32.mrf.mxu0 }
 0x1f6   : > { %3180 = vmatpush2.bf16.msra.mxu0 %v4806_v47 }
 0x1f7   : > { %3181 = vmatprep.subr.bf16.mxu0 %v4814_v51  ;;  %v2112_v57 = vpop.f32.mrf.mxu0 }
 0x1f8   : > { %v2113_v15 = vadd.f32 %v2112_v57, %v2060_v1 }
 0x1f9   : > { %v2114_v60 = vpop.f32.mrf.mxu0 }
 0x1fa   : > { %3182 = vmatpush2.bf16.msra.mxu0 %v4812_v48 }
 0x1fb   : > { %3183 = vmatprep.subr.bf16.mxu0 %v4820_v50  ;;  %v2116_v62 = vpop.f32.mrf.mxu0 }
 0x1fc   : > { %v2117_v27 = vadd.f32 %v2116_v62, %v2064_v19  ;;  %v4863_v19 = vld [vmem:[#allocation8 + $0x268] ss:$16 sps:$4 sm:$0xff]  }
 0x1fd   : > { %v2120_v0 = vpop.f32.mrf.mxu0 }
 0x1fe   : > { %3184 = vmatpush2.bf16.msra.mxu0 %v4818_v52 }
 0x1ff   : > { %3185 = vmatprep.subr.bf16.mxu0 %v4826_v55  ;;  %v2122_v3 = vpop.f32.mrf.mxu0 }
 0x200   : > { %v2123_v40 = vadd.f32 %v2122_v3, %v2070_v28  ;;  %v4877_v28 = vld [vmem:[#allocation8 + $0x3ec] ss:$16 sps:$4 sm:$0xff]  }
 0x201   : > { %v2124_v7 = vpop.f32.mrf.mxu0 }
 0x202   : > { %3186 = vmatpush2.bf16.msra.mxu0 %v4824_v58 }
 0x203   : > { %v2126_v8 = vpop.f32.mrf.mxu0 }
 0x204   : > { %v2127_v57 = vadd.f32 %v2126_v8, %v2074_v41  ;;  %v4859_v8 = vld [vmem:[#allocation8 + $0x2ac] ss:$16 sps:$4 sm:$0xff]   ;;  %v4901_v41 = vld [vmem:[#allocation10 + $0x70] sm:$0xff]  }
 0x205   : > { %3188 = vmatmul.mubr.bf16.vlgmr.msra.gmra.mxu0 %v5429_v23  ;;  %v610_v23 = vrot.slane %v5421_v14, %v609_v6 }
 0x206   : > { %3197 = vmatprep.mubr.bf16.mxu0 %v5432_v21 }
 0x207   : > { %v2058_v9 = vadd.f32 %v2057_v53, %v610_v23  ;;  %v2062_v13 = vadd.f32 %v2061_v59, %v610_v23  ;;  %v2068_v30 = vadd.f32 %v2067_v63, %v610_v23  ;;  %v2072_v33 = vadd.f32 %v2071_v18, %v610_v23  ;;  %v4854_v23 = vld [vmem:[#allocation8 + $0x2c8] ss:$16 sps:$4 sm:$0xff]  }
 0x209   : > { %v2111_v16 = vadd.f32 %v2110_v54, %v2058_v9  ;;  %v2115_v20 = vadd.f32 %v2114_v60, %v2062_v13  ;;  %v2121_v44 = vadd.f32 %v2120_v0, %v2068_v30  ;;  %v2125_v51 = vadd.f32 %v2124_v7, %v2072_v33  ;;  %v4851_v60 = vld [vmem:[#allocation8 + $0x2e8] ss:$16 sps:$4 sm:$0xff]   ;;  %v4856_v0 = vld [vmem:[#allocation8 + $0x2cc] ss:$16 sps:$4 sm:$0xff]  }
 0x20a   : > { %v4857_v13 = vld [vmem:[#allocation8 + $0x2a8] ss:$16 sps:$4 sm:$0xff]   ;;  %v4880_v30 = vld [vmem:[#allocation8 + $0x3cc] ss:$16 sps:$4 sm:$0xff]  }
 0x20b   : > { %v4881_v33 = vld [vmem:[#allocation8 + $0x3a8] ss:$16 sps:$4 sm:$0xff]  }
 0x20d   : > { %3198 = vmatmul.mubr.bf16.gmra.mxu0 %v5434_v24 }
 0x215   : > { %v2216_v26 = vpop.f32.mrf.mxu0 }
 0x216   : > { %v2163_v11 = vpop.f32.mrf.mxu1 }
 0x217   : > { %v2218_v42 = vpop.f32.mrf.mxu0  ;;  %v2164_v22 = vadd.f32 %v2163_v11, %v2111_v16  ;;  %v4862_v16 = vld [vmem:[#allocation8 + $0x28c] ss:$16 sps:$4 sm:$0xff]  }
 0x218   : > { %v2165_v29 = vpop.f32.mrf.mxu1 }
 0x219   : > { %v2166_v21 = vadd.f32 %v2165_v29, %v2113_v15  ;;  %v2220_v25 = vpop.f32.mrf.mxu0  ;;  %v2217_v37 = vadd.f32 %v2216_v26, %v2164_v22  ;;  %v4860_v29 = vld [vmem:[#allocation8 + $0x288] ss:$16 sps:$4 sm:$0xff]   ;;  %v4871_v22 = vld [vmem:[#allocation8 + $0x22c] ss:$16 sps:$4 sm:$0xff]  }
 0x21a   : > { %v2167_v24 = vpop.f32.mrf.mxu1 }
 0x21b   : > { %v2168_v14 = vadd.f32 %v2167_v24, %v2115_v20  ;;  %v2222_v32 = vpop.f32.mrf.mxu0  ;;  %v2219_v34 = vadd.f32 %v2218_v42, %v2166_v21  ;;  %v2237_v54 = vmax.f32 %v2217_v37, 0.0  ;;  %v4865_v42 = vld [vmem:[#allocation8 + $0x26c] ss:$16 sps:$4 sm:$0xff]   ;;  %v4866_v21 = vld [vmem:[#allocation8 + $0x248] ss:$16 sps:$4 sm:$0xff]  }
 0x21c   : > { %v2169_v31 = vpop.f32.mrf.mxu1  ;;  %v4868_v20 = vld [vmem:[#allocation8 + $0x24c] ss:$16 sps:$4 sm:$0xff]   ;;  %v4869_v24 = vld [vmem:[#allocation8 + $0x228] ss:$16 sps:$4 sm:$0xff]  }
 0x21d   : > { %v2221_v35 = vadd.f32 %v2220_v25, %v2168_v14  ;;  %v2170_v36 = vadd.f32 %v2169_v31, %v2117_v27  ;;  %v2226_v39 = vpop.f32.mrf.mxu0  ;;  %v2238_v48 = vmax.f32 %v2219_v34, 0.0  ;;  %v4874_v25 = vld [vmem:[#allocation8 + $0x20c] ss:$16 sps:$4 sm:$0xff]   ;;  %v4872_v27 = vld [vmem:[#allocation8 + $0x208] ss:$16 sps:$4 sm:$0xff]  }
 0x21e   : > { %v2173_v38 = vpop.f32.mrf.mxu1  ;;  %v4875_v14 = vld [vmem:[#allocation8 + $0x3e8] ss:$16 sps:$4 sm:$0xff]   ;;  %v4886_v34 = vld [vmem:[#allocation8 + $0x38c] ss:$16 sps:$4 sm:$0xff]  }
 0x21f   : > { %v2223_v43 = vadd.f32 %v2222_v32, %v2170_v36  ;;  %v2241_v45 = vmax.f32 %v2221_v35, 0.0  ;;  %v2228_v47 = vpop.f32.mrf.mxu0  ;;  %v2174_v52 = vadd.f32 %v2173_v38, %v2121_v44  ;;  %v4878_v31 = vld [vmem:[#allocation8 + $0x3c8] ss:$16 sps:$4 sm:$0xff]   ;;  %v4883_v32 = vld [vmem:[#allocation8 + $0x3ac] ss:$16 sps:$4 sm:$0xff]  }
 0x220   : > { %v2175_v46 = vpop.f32.mrf.mxu1  ;;  %v4884_v35 = vld [vmem:[#allocation8 + $0x388] ss:$16 sps:$4 sm:$0xff]   ;;  %v4889_v36 = vld [vmem:[#allocation8 + $0x36c] ss:$16 sps:$4 sm:$0xff]  }
 0x221   : > { %v2242_v50 = vmax.f32 %v2223_v43, 0.0  ;;  %v2176_v53 = vadd.f32 %v2175_v46, %v2123_v40  ;;  %v2230_v56 = vpop.f32.mrf.mxu0  ;;  %v5449_v61 = vpack.c.bf16 %v2241_v45, %v2237_v54  ;;  %v2227_v7 = vadd.f32 %v2226_v39, %v2174_v52  ;;  %v4887_v37 = vld [vmem:[#allocation8 + $0x368] ss:$16 sps:$4 sm:$0xff]   ;;  %v4892_v39 = vld [vmem:[#allocation8 + $0x34c] ss:$16 sps:$4 sm:$0xff]   ;;  %v4902_v43 = vld [vmem:[#allocation10 + $0x30] sm:$0xff]  }
 0x222   : > { %v2177_v55 = vpop.f32.mrf.mxu1  ;;  %v4899_v38 = vld [vmem:[#allocation10 + $0x78] sm:$0xff]   ;;  %v4903_v45 = vld [vmem:[#allocation10 + $0x68] sm:$0xff]  }
 0x223   : > { %v2254_v58 = vpack.c.bf16 %v2242_v50, %v2238_v48  ;;  %v2178_v59 = vadd.f32 %v2177_v55, %v2125_v51  ;;  %v2232_v63 = vpop.f32.mrf.mxu0  ;;  %v2229_v2 = vadd.f32 %v2228_v47, %v2176_v53  ;;  %v2245_v11 = vmax.f32 %v2227_v7, 0.0  ;;  %v4900_v40 = vld [vmem:[#allocation10 + $0x38] sm:$0xff]   ;;  %4196 = vmatprep.subr.bf16.mxu0 %v4899_v38  ;;  %v4904_v47 = vld [vmem:[#allocation10 + $0x28] sm:$0xff]   ;;  %v4905_v48 = vld [vmem:[#allocation10 + $0x60] sm:$0xff]  }
 0x224   : > { %v2179_v62 = vpop.f32.mrf.mxu1  ;;  %4197 = vmatpush3.bf16.msra.mxu0 %v4900_v40  ;;  %v4890_v44 = vld [vmem:[#allocation8 + $0x348] ss:$16 sps:$4 sm:$0xff]   ;;  %v4895_v46 = vld [vmem:[#allocation8 + $0x32c] ss:$16 sps:$4 sm:$0xff]   ;;  %v4906_v53 = vld [vmem:[#allocation10 + $0x20] sm:$0xff]  }
 0x225   : > { %v2180_v3 = vadd.f32 %v2179_v62, %v2127_v57  ;;  %v2231_v18 = vadd.f32 %v2230_v56, %v2178_v59  ;;  %3134 = vmatprep.mubr.bf16.mxu1 %v2254_v58  ;;  %v2246_v1 = vmax.f32 %v2229_v2, 0.0  ;;  %4198 = vmatprep.subr.bf16.mxu0 %v4901_v41  ;;  %v4893_v51 = vld [vmem:[#allocation8 + $0x328] ss:$16 sps:$4 sm:$0xff]   ;;  %v4898_v50 = vld [vmem:[#allocation8 + $0x30c] ss:$16 sps:$4 sm:$0xff]   ;;  %v4909_v56 = vld [vmem:[#allocation10 + $0x50] sm:$0xff]  }
 0x226   : > { %3135 = vmatmul.mubr.bf16.vlgmr.msra.gmra.mxu1 %v5449_v61  ;;  %v4896_v54 = vld [vmem:[#allocation8 + $0x308] ss:$16 sps:$4 sm:$0xff]   ;;  %v4910_v57 = vld [vmem:[#allocation10 + $0x10] sm:$0xff]   ;;  %v4914_v62 = vld [vmem:[#allocation10] sm:$0xff]  }
 0x227   : > { %v2233_v4 = vadd.f32 %v2232_v63, %v2180_v3  ;;  %3209 = vmatpush1.bf16.msra.mxu1 %v4851_v60  ;;  %v2249_v10 = vmax.f32 %v2231_v18, 0.0  ;;  %v4907_v52 = vld [vmem:[#allocation10 + $0x58] sm:$0xff]   ;;  %v4912_v59 = vld [vmem:[#allocation10 + $0x8] sm:$0xff]   ;;  %v4913_v60 = vld [vmem:[#allocation10 + $0x40] sm:$0xff]  }
 0x228   : > { %3210 = vmatprep.subr.bf16.mxu1 %v4856_v0  ;;  %4199 = vmatpush3.bf16.msra.mxu0 %v4902_v43  ;;  %v4908_v55 = vld [vmem:[#allocation10 + $0x18] sm:$0xff]   ;;  %v4918_v2 = vld [vmem:[#allocation10 + $0xb0] sm:$0xff]   ;;  %v4919_v3 = vld [vmem:[#allocation10 + $0xe8] sm:$0xff]  }
 0x229   : > { %v2250_v9 = vmax.f32 %v2233_v4, 0.0  ;;  %v5454_v15 = vpack.c.bf16 %v2249_v10, %v2245_v11  ;;  %4200 = vmatprep.subr.bf16.mxu0 %v4903_v45  ;;  %v4915_v63 = vld [vmem:[#allocation10 + $0xf8] sm:$0xff]   ;;  %v4920_v18 = vld [vmem:[#allocation10 + $0xa8] sm:$0xff]   ;;  %v4921_v7 = vld [vmem:[#allocation10 + $0xe0] sm:$0xff]  }
 0x22a   : > { %v4916_v0 = vld [vmem:[#allocation10 + $0xb8] sm:$0xff]   ;;  %v4922_v4 = vld [vmem:[#allocation10 + $0xa0] sm:$0xff]   ;;  %v4928_v11 = vld [vmem:[#allocation10 + $0x88] sm:$0xff]  }
 0x22b   : > { %v5452_v26 = vpack.c.bf16 %v2250_v9, %v2246_v1  ;;  %3211 = vmatpush1.bf16.msra.mxu1 %v4854_v23  ;;  %v4923_v23 = vld [vmem:[#allocation10 + $0xd8] sm:$0xff]   ;;  %v4926_v1 = vld [vmem:[#allocation10 + $0x90] sm:$0xff]   ;;  %v4927_v9 = vld [vmem:[#allocation10 + $0xc8] sm:$0xff]  }
 0x22c   : > { %3212 = vmatprep.subr.bf16.mxu1 %v4859_v8  ;;  %4201 = vmatpush3.bf16.msra.mxu0 %v4904_v47  ;;  %v4924_v10 = vld [vmem:[#allocation10 + $0x98] sm:$0xff]   ;;  %v4925_v8 = vld [vmem:[#allocation10 + $0xd0] sm:$0xff]  }
 0x22d   : > { %3144 = vmatprep.mubr.bf16.mxu1 %v5452_v26  ;;  %4202 = vmatprep.subr.bf16.mxu0 %v4905_v48 }
 0x22e   : > { %3145 = vmatmul.mubr.bf16.gmra.mxu1 %v5454_v15 }
 0x22f   : > { %3213 = vmatpush1.bf16.msra.mxu1 %v4857_v13  ;;  %3240 = vmatprep.mubr.bf16.mxu1 %v2254_v58  ;;  %v4911_v58 = vld [vmem:[#allocation10 + $0x48] sm:$0xff]   ;;  %v4930_v13 = vld [vmem:[#allocation10 + $0x80] sm:$0xff]  }
 0x230   : > { %3214 = vmatprep.subr.bf16.mxu1 %v4862_v16  ;;  %4203 = vmatpush3.bf16.msra.mxu0 %v4906_v53 }
 0x231   : > { %4204 = vmatprep.subr.bf16.mxu0 %v4907_v52 }
 0x233   : > { %3215 = vmatpush1.bf16.msra.mxu1 %v4860_v29 }
 0x234   : > { %3216 = vmatprep.subr.bf16.mxu1 %v4865_v42  ;;  %4205 = vmatpush3.bf16.msra.mxu0 %v4908_v55 }
 0x235   : > { %4206 = vmatprep.subr.bf16.mxu0 %v4909_v56 }
 0x237   : > { %3217 = vmatpush1.bf16.msra.mxu1 %v4863_v19  ;;  %v2387_v19 = vld [vmem:[%s5529_s4] sm:$0xf] }
 0x238   : > { %3218 = vmatprep.subr.bf16.mxu1 %v4868_v20  ;;  %4207 = vmatpush3.bf16.msra.mxu0 %v4910_v57 }
 0x239   : > { %4208 = vmatprep.subr.bf16.mxu0 %v4911_v58 }
 0x23b   : > { %3219 = vmatpush1.bf16.msra.mxu1 %v4866_v21  ;;  %v2396_v21 = vrot.slane %v2387_v19, %v605_v12 }
 0x23c   : > { %3220 = vmatprep.subr.bf16.mxu1 %v4871_v22  ;;  %4209 = vmatpush3.bf16.msra.mxu0 %v4912_v59  ;;  %v2392_v22 = vrot.slane %v2387_v19, %v601_v17 }
 0x23d   : > { %4210 = vmatprep.subr.bf16.mxu0 %v4913_v60 }
 0x23f   : > { %3221 = vmatpush1.bf16.msra.mxu1 %v4869_v24 }
 0x240   : > { %3222 = vmatprep.subr.bf16.mxu1 %v4874_v25  ;;  %4211 = vmatpush3.bf16.msra.mxu0 %v4914_v62 }
 0x243   : > { %3223 = vmatpush1.bf16.msra.mxu1 %v4872_v27 }
 0x244   : > { %3224 = vmatprep.subr.bf16.mxu1 %v4877_v28 }
 0x247   : > { %3225 = vmatpush2.bf16.msra.mxu1 %v4875_v14 }
 0x248   : > { %3226 = vmatprep.subr.bf16.mxu1 %v4880_v30 }
 0x24b   : > { %3227 = vmatpush2.bf16.msra.mxu1 %v4878_v31 }
 0x24c   : > { %3228 = vmatprep.subr.bf16.mxu1 %v4883_v32 }
 0x24f   : > { %3229 = vmatpush2.bf16.msra.mxu1 %v4881_v33 }
 0x250   : > { %3230 = vmatprep.subr.bf16.mxu1 %v4886_v34 }
 0x253   : > { %3231 = vmatpush2.bf16.msra.mxu1 %v4884_v35 }
 0x254   : > { %3232 = vmatprep.subr.bf16.mxu1 %v4889_v36 }
 0x257   : > { %3233 = vmatpush2.bf16.msra.mxu1 %v4887_v37 }
 0x258   : > { %3234 = vmatprep.subr.bf16.mxu1 %v4892_v39 }
 0x25b   : > { %3235 = vmatpush2.bf16.msra.mxu1 %v4890_v44 }
 0x25c   : > { %3236 = vmatprep.subr.bf16.mxu1 %v4895_v46 }
 0x25f   : > { %3237 = vmatpush2.bf16.msra.mxu1 %v4893_v51 }
 0x260   : > { %3238 = vmatprep.subr.bf16.mxu1 %v4898_v50 }
 0x263   : > { %3239 = vmatpush2.bf16.msra.mxu1 %v4896_v54 }
 0x264   : > { %4224 = vmatprep.subr.bf16.mxu1 %v4915_v63 }
 0x266   : > { %3241 = vmatmul.mubr.bf16.vlgmr.msra.gmra.mxu1 %v5449_v61  ;;  %v4917_v61 = vld [vmem:[#allocation10 + $0xf0] sm:$0xff]  }
 0x267   : > { %3250 = vmatprep.mubr.bf16.mxu1 %v5452_v26  ;;  %4225 = vmatpush3.bf16.msra.mxu1 %v4916_v0  ;;  %v4929_v26 = vld [vmem:[#allocation10 + $0xc0] sm:$0xff]  }
 0x268   : > { %4226 = vmatprep.subr.bf16.mxu1 %v4917_v61 }
 0x26b   : > { %4227 = vmatpush3.bf16.msra.mxu1 %v4918_v2 }
 0x26c   : > { %4228 = vmatprep.subr.bf16.mxu1 %v4919_v3 }
 0x26e   : > { %3251 = vmatmul.mubr.bf16.gmra.mxu1 %v5454_v15 }
 0x26f   : > { %4229 = vmatpush3.bf16.msra.mxu1 %v4920_v18 }
 0x270   : > { %4230 = vmatprep.subr.bf16.mxu1 %v4921_v7 }
 0x273   : > { %4231 = vmatpush3.bf16.msra.mxu1 %v4922_v4  ;;  %v2404_v4 = vrot.slane %v2387_v19, %v613_v5 }
 0x274   : > { %4232 = vmatprep.subr.bf16.mxu1 %v4923_v23  ;;  %v2400_v23 = vrot.slane %v2387_v19, %v609_v6 }
 0x277   : > { %4233 = vmatpush3.bf16.msra.mxu1 %v4924_v10 }
 0x278   : > { %4234 = vmatprep.subr.bf16.mxu1 %v4925_v8 }
 0x27b   : > { %4235 = vmatpush3.bf16.msra.mxu1 %v4926_v1 }
 0x27c   : > { %4236 = vmatprep.subr.bf16.mxu1 %v4927_v9 }
 0x27f   : > { %4237 = vmatpush3.bf16.msra.mxu1 %v4928_v11 }
 0x280   : > { %4238 = vmatprep.subr.bf16.mxu1 %v4929_v26 }
 0x283   : > { %4239 = vmatpush3.bf16.msra.mxu1 %v4930_v13 }
 0x285   : > { %v3083_v15 = vpop.f32.mrf.mxu0 }
 0x286   : > { %v3084_v30 = vadd.f32 %v3083_v15, %v2392_v22 }
 0x287   : > { %v3085_v16 = vpop.f32.mrf.mxu0 }
 0x288   : > { %v3086_v28 = vadd.f32 %v3085_v16, %v2396_v21 }
 0x289   : > { %v3087_v29 = vpop.f32.mrf.mxu0 }
 0x28a   : > { %v3088_v14 = vadd.f32 %v3087_v29, %v2392_v22 }
 0x28b   : > { %v3089_v42 = vpop.f32.mrf.mxu0 }
 0x28c   : > { %v3090_v32 = vadd.f32 %v3089_v42, %v2396_v21 }
 0x28d   : > { %v3093_v20 = vpop.f32.mrf.mxu0 }
 0x28e   : > { %v3094_v51 = vadd.f32 %v3093_v20, %v2392_v22 }
 0x28f   : > { %v3095_v25 = vpop.f32.mrf.mxu0 }
 0x290   : > { %v3096_v45 = vadd.f32 %v3095_v25, %v2396_v21 }
 0x291   : > { %v3097_v35 = vpop.f32.mrf.mxu0 }
 0x292   : > { %v3098_v46 = vadd.f32 %v3097_v35, %v2392_v22 }
 0x293   : > { %v3099_v43 = vpop.f32.mrf.mxu0 }
 0x294   : > { %v3100_v53 = vadd.f32 %v3099_v43, %v2396_v21 }
 0x2c5   : > { %v3189_v61 = vpop.f32.mrf.mxu0 }
 0x2c6   : > { %v3190_v26 = vadd.f32 %v3189_v61, %v2400_v23 }
 0x2c7   : > { %v3191_v2 = vpop.f32.mrf.mxu0 }
 0x2c8   : > { %v3192_v9 = vadd.f32 %v3191_v2, %v2404_v4 }
 0x2c9   : > { %v3193_v3 = vpop.f32.mrf.mxu0 }
 0x2ca   : > { %v3194_v11 = vadd.f32 %v3193_v3, %v2400_v23 }
 0x2cb   : > { %v3195_v18 = vpop.f32.mrf.mxu0 }
 0x2cc   : > { %v3196_v15 = vadd.f32 %v3195_v18, %v2404_v4 }
 0x2cd   : > { %v3199_v7 = vpop.f32.mrf.mxu0 }
 0x2cf   : > { %v3201_v8 = vpop.f32.mrf.mxu0 }
 0x2d1   : > { %v3203_v42 = vpop.f32.mrf.mxu0 }
 0x2d3   : > { %v3205_v49 = vpop.f32.mrf.mxu0 }
 0x2e6   : > { %v3136_v24 = vpop.f32.mrf.mxu1 }
 0x2e7   : > { %v3137_v36 = vadd.f32 %v3136_v24, %v3084_v30 }
 0x2e8   : > { %v3138_v27 = vpop.f32.mrf.mxu1 }
 0x2e9   : > { %v3139_v33 = vadd.f32 %v3138_v27, %v3086_v28  ;;  %v3261_v17 = vmax.f32 %v3137_v36, 0.0  ;;  %v3202_v28 = vadd.f32 %v3201_v8, %v2404_v4 }
 0x2ea   : > { %v3140_v31 = vpop.f32.mrf.mxu1 }
 0x2eb   : > { %v3141_v34 = vadd.f32 %v3140_v31, %v3088_v14  ;;  %v3262_v12 = vmax.f32 %v3139_v33, 0.0  ;;  %v3204_v14 = vadd.f32 %v3203_v42, %v2400_v23  ;;  %v3200_v31 = vadd.f32 %v3199_v7, %v2400_v23 }
 0x2ec   : > { %v3142_v37 = vpop.f32.mrf.mxu1 }
 0x2ed   : > { %v3143_v38 = vadd.f32 %v3142_v37, %v3090_v32  ;;  %v3265_v39 = vmax.f32 %v3141_v34, 0.0  ;;  %v3206_v34 = vadd.f32 %v3205_v49, %v2404_v4 }
 0x2ee   : > { %v3146_v40 = vpop.f32.mrf.mxu1 }
 0x2ef   : > { %v3266_v41 = vmax.f32 %v3143_v38, 0.0  ;;  %v3277_v48 = vpack.c.bf16 %v3265_v39, %v3261_v17  ;;  %v3147_v55 = vadd.f32 %v3146_v40, %v3094_v51 }
 0x2f0   : > { %v3148_v44 = vpop.f32.mrf.mxu1 }
 0x2f1   : > { %v3278_v47 = vpack.c.bf16 %v3266_v41, %v3262_v12  ;;  %v3149_v54 = vadd.f32 %v3148_v44, %v3096_v45  ;;  %v3269_v62 = vmax.f32 %v3147_v55, 0.0 }
 0x2f2   : > { %v3150_v50 = vpop.f32.mrf.mxu1 }
 0x2f3   : > { %v3151_v52 = vadd.f32 %v3150_v50, %v3098_v46  ;;  %3580 = vmatprep.mubr.bf16.mxu0 %v3278_v47  ;;  %v3270_v59 = vmax.f32 %v3149_v54, 0.0 }
 0x2f4   : > { %v3152_v56 = vpop.f32.mrf.mxu1  ;;  %3581 = vmatmul.mubr.bf16.vlgmr.msra.gmra.mxu0 %v3277_v48 }
 0x2f5   : > { %v3153_v57 = vadd.f32 %v3152_v56, %v3100_v53  ;;  %v3273_v58 = vmax.f32 %v3151_v52, 0.0  ;;  %v4157_v53 = vld [vmem:[%s5531_s6] ss:$0 sm:$0xff] }
 0x2f7   : > { %v3274_v60 = vmax.f32 %v3153_v57, 0.0  ;;  %v3281_v0 = vpack.c.bf16 %v3273_v58, %v3269_v62 }
 0x2f9   : > { %v3282_v63 = vpack.c.bf16 %v3274_v60, %v3270_v59 }
 0x2fb   : > { %3588 = vmatprep.mubr.bf16.mxu0 %v3282_v63 }
 0x2fc   : > { %3589 = vmatmul.mubr.bf16.gmra.mxu0 %v3281_v0 }
 0x326   : > { %v3242_v10 = vpop.f32.mrf.mxu1 }
 0x327   : > { %v3243_v20 = vadd.f32 %v3242_v10, %v3190_v26 }
 0x328   : > { %v3244_v1 = vpop.f32.mrf.mxu1 }
 0x329   : > { %v3245_v16 = vadd.f32 %v3244_v1, %v3192_v9  ;;  %v3263_v6 = vmax.f32 %v3243_v20, 0.0 }
 0x32a   : > { %v3246_v13 = vpop.f32.mrf.mxu1 }
 0x32b   : > { %v3247_v29 = vadd.f32 %v3246_v13, %v3194_v11  ;;  %v3264_v5 = vmax.f32 %v3245_v16, 0.0 }
 0x32c   : > { %v3248_v21 = vpop.f32.mrf.mxu1 }
 0x32d   : > { %v3249_v22 = vadd.f32 %v3248_v21, %v3196_v15  ;;  %v3267_v24 = vmax.f32 %v3247_v29, 0.0 }
 0x32e   : > { %v3252_v25 = vpop.f32.mrf.mxu1 }
 0x32f   : > { %v3268_v27 = vmax.f32 %v3249_v22, 0.0  ;;  %v3279_v32 = vpack.c.bf16 %v3267_v24, %v3263_v6  ;;  %v3253_v37 = vadd.f32 %v3252_v25, %v3200_v31 }
 0x330   : > { %v3254_v19 = vpop.f32.mrf.mxu1 }
 0x331   : > { %v3280_v30 = vpack.c.bf16 %v3268_v27, %v3264_v5  ;;  %v3255_v35 = vadd.f32 %v3254_v19, %v3202_v28  ;;  %v3271_v43 = vmax.f32 %v3253_v37, 0.0 }
 0x332   : > { %v3256_v33 = vpop.f32.mrf.mxu1 }
 0x333   : > { %v3257_v36 = vadd.f32 %v3256_v33, %v3204_v14  ;;  %3629 = vmatprep.mubr.bf16.mxu1 %v3280_v30  ;;  %v3272_v12 = vmax.f32 %v3255_v35, 0.0 }
 0x334   : > { %v3258_v38 = vpop.f32.mrf.mxu1  ;;  %3630 = vmatmul.mubr.bf16.vlgmr.msra.gmra.mxu1 %v3279_v32 }
 0x335   : > { %v3259_v39 = vadd.f32 %v3258_v38, %v3206_v34  ;;  %v3275_v40 = vmax.f32 %v3257_v36, 0.0 }
 0x337   : > { %v3276_v41 = vmax.f32 %v3259_v39, 0.0  ;;  %v3283_v44 = vpack.c.bf16 %v3275_v40, %v3271_v43 }
 0x339   : > { %v3284_v17 = vpack.c.bf16 %v3276_v41, %v3272_v12 }
 0x33b   : > { %3637 = vmatprep.mubr.bf16.mxu1 %v3284_v17 }
 0x33c   : > { %3638 = vmatmul.mubr.bf16.gmra.mxu1 %v3283_v44 }
 0x3b4   : > { %v4212_v45 = vpop.f32.mrf.mxu0 }
 0x3b6   : > { %v4213_v46 = vpop.f32.mrf.mxu0 }
 0x3b7   : > { %v4214_v50 = vadd.f32 %v4213_v46, %v4212_v45 }
 0x3b8   : > { %v4215_v47 = vpop.f32.mrf.mxu0 }
 0x3b9   : > { %v3583_v56 = vadd.f32 %v4214_v50, %v4157_v53 }
 0x3ba   : > { %v4216_v51 = vpop.f32.mrf.mxu0 }
 0x3bb   : > { %v4217_v57 = vadd.f32 %v4216_v51, %v4215_v47 }
 0x3bc   : > { %v4218_v48 = vpop.f32.mrf.mxu0 }
 0x3bd   : > { %v3586_v0 = vadd.f32 %v4217_v57, %v4157_v53 }
 0x3be   : > { %v4219_v54 = vpop.f32.mrf.mxu0 }
 0x3bf   : > { %v4220_v61 = vadd.f32 %v4219_v54, %v4218_v48 }
 0x3c0   : > { %v4221_v59 = vpop.f32.mrf.mxu0 }
 0x3c1   : > { %v3591_v23 = vadd.f32 %v4220_v61, %v4157_v53 }
 0x3c2   : > { %v4222_v3 = vpop.f32.mrf.mxu0 }
 0x3c3   : > { %v4223_v10 = vadd.f32 %v4222_v3, %v4221_v59 }
 0x3c5   : > { %v3594_v26 = vadd.f32 %v4223_v10, %v4157_v53 }
 0x3f4   : > { %v4240_v52 = vpop.f32.mrf.mxu1 }
 0x3f6   : > { %v4241_v55 = vpop.f32.mrf.mxu1 }
 0x3f7   : > { %v4242_v58 = vadd.f32 %v4241_v55, %v4240_v52 }
 0x3f8   : > { %v4243_v60 = vpop.f32.mrf.mxu1 }
 0x3f9   : > { %v3632_v62 = vadd.f32 %v4242_v58, %v3583_v56 }
 0x3fa   : > { %v4244_v63 = vpop.f32.mrf.mxu1 }
 0x3fb   : > { %3646 = vst [vmem:[%s353_s20] sm:$0xff] %v3632_v62  ;;  %v4245_v2 = vadd.f32 %v4244_v63, %v4243_v60 }
 0x3fc   : > { %v4246_v18 = vpop.f32.mrf.mxu1 }
 0x3fd   : > { %v3635_v7 = vadd.f32 %v4245_v2, %v3586_v0 }
 0x3fe   : > { %v4247_v4 = vpop.f32.mrf.mxu1 }
 0x3ff   : > { %3647 = vst [vmem:[%s353_s20 + $0x8] sm:$0xff] %v3635_v7  ;;  %v4248_v8 = vadd.f32 %v4247_v4, %v4246_v18 }
 0x400   : > { %v4249_v1 = vpop.f32.mrf.mxu1 }
 0x401   : > { %v3640_v9 = vadd.f32 %v4248_v8, %v3591_v23 }
 0x402   : > { %v4250_v11 = vpop.f32.mrf.mxu1 }
 0x403   : > { %3648 = vst [vmem:[%s353_s20 + $0x10] sm:$0xff] %v3640_v9  ;;  %v4251_v13 = vadd.f32 %v4250_v11, %v4249_v1 }
 0x405   : > { %v3643_v15 = vadd.f32 %v4251_v13, %v3594_v26 }
 0x407   : > { %3649 = vst [vmem:[%s353_s20 + $0x18] sm:$0xff] %v3643_v15 }
 0x408   : > { %5081 = shalt.err (!%p5078_p10)
}
 0x409   : > { %s5082_s9 = scalar_lea.hbm %s5482_s22, 512  ;;  %s5086_s19 = scalar_lea.hbm %s5532_s7, 1024 }
 0x40a   : > { %p5083_p3 = scmp.ne.s32.totalorder %s5482_s22, %s5082_s9  ;;  %p5087_p11 = scmp.lt.s32.totalorder %s5482_s22, %s5532_s7 }
 0x40b   : > { %p5088_p4 = scmp.lt.s32.totalorder %s5086_s19, %s5082_s9 }
 0x40c   : > { %p5084_p8 = pnand %p5083_p3, %p5552_p1 }
 0x40d   : > { %p5089_p7 = por %p5088_p4, %p5087_p11 }
 0x40e   : > { %p5085_p6 = pneg %p5084_p8 }
 0x410   : > { %p5090_p12 = pnand %p5089_p7, %p5085_p6 }
 0x412   : > { %5093 = shalt.err (!%p5090_p12)
}
 0x413   : > { %s5155_s23 = smov 128   ;;  %s5156_s1 = smov 8  }
 0x414   : > { %4273 = dma.vmem_to_hbm [thread:$0]  (%p5552_p1), %s5477_s11, 512, %s5482_s22, %s3651_s13, %s5155_s23, %s5155_s23, %s5156_s1  }
 0x415 PF: > { %s3679_s17 = sand.u32 1, %s5128_s24   ;;  %p5553_p9 = scmp.ne.s32.totalorder %s5539_s8, 0 }
 0x416   : > { %p5554_p13 = scmp.ge.s32.totalorder %s5140_s27, 2  ;;  %s3680_s28 = scalar_lea.sflag [#allocation4], %s3679_s17 }
 0x418   : > { %p4293_p2 = pnand %p5554_p13, %p5553_p9 }
 0x41a   : > { %p4294_p0 = pneg %p4293_p2 }
 0x41c   : > { %5123 = dma.done.wait (%p4294_p0), %s3680_s28, 512  }
 0x41d   : > { %5125 = vsyncadd (%p4294_p0), %s3680_s28, 4294966784  ;;  %p22_p5 = scmp.ge.s32.totalorder %s5285_s21, 4   ;;  %s5555_s24 = smov %s5132_s25 }
 0x41e   : > { %s5556_s25 = smov %s5136_s26  ;;  %s5557_s26 = smov %s5294_s29 }
 0x41f   : > { %s5558_s27 = smov %s5285_s21  ;;  %24 = sbr.rel (!%p22_p5) target bundleno = 9 (0x9), region = 109 }
 0x424   :  { %3685 = vsyncpa [#allocation3], 1 }
 0x425   :  { %3687 = vsyncpa [#allocation3 + $0x1], 1 }
 0x426   :  { %3688 = vsyncpa [#allocation6], 1 }
 0x427   :  { %3689 = vsyncpa [#allocation9], 1 }
 0x428   :  { %3690 = vsyncpa [#allocation4], 1 }
 0x429   :  { %3692 = vsyncpa [#allocation4 + $0x1], 1 }

</bundles_post_ra>
